<compile_context>
chip_gen: v5e
topology: v5e:2x2
jax: 0.10.0
libtpu: 0.0.40
codegen_flags: <defaults>
</compile_context>

<pallas_src>
import functools

import jax
import jax.numpy as jnp
from jax import lax
from jax.experimental import pallas as pl
from jax.experimental.pallas import tpu as pltpu

DIMS = 32
HEAD = 4
HEAD_DIM = DIMS // HEAD
MLP = DIMS * 4
EPS = 1e-8        # the PyTorch RMSNorm in the spec is constructed with eps=1e-08


# -----------------------------------------------------------------------------
# Kernel
# -----------------------------------------------------------------------------
def _rmsnorm(x, w):
    # F.rms_norm: x * rsqrt(mean(x^2) + eps) * weight
    ms = jnp.mean(x * x, axis=-1, keepdims=True)
    return x * lax.rsqrt(ms + EPS) * w


def residual_kernel(
    zf_ref,                                 # SMEM (1,)  clamp(softplus(factor))
    x_ref,                                  # (1, BB*T, D)
    cos_ref, sin_ref,                       # (T, D)     shared rope tables (unscaled)
    qb_ref,                                 # (T, D)     rotary(q-bias) * scale^2
    wpack_ref,                              # (D, 5D)    [s2*WqT | s2*rh(WqT) | WkT | rh(WkT) | WvT]
    wo_t_ref,                               # (D, D)
    w1_t_ref,                               # (D, 4D)
    w2_t_ref,                               # (4D, D)
    vecs_ref,                               # (8, 128)   [bv | bo | lna_w | lnc_w | b2 | b1 | 0 | 0]
    out_ref,                                # (1, BB*T, D)
    *, BB, T,
):
    x0 = x_ref[0]                           # (N, D) with N = BB*T
    N = BB * T
    zero_factor = zf_ref[0]

    # Unpack the stacked bias / norm-weight slab (single VMEM tile).
    vecs = vecs_ref[...]
    bv = vecs[0:1, 0:DIMS]
    bo = vecs[1:2, 0:DIMS]
    lna_w = vecs[2:3, 0:DIMS]
    lnc_w = vecs[3:4, 0:DIMS]
    b2 = vecs[4:5, 0:DIMS]
    b1 = vecs[5:6, :]                       # (1, 4D) — MLP == 128 lanes

    # ---------------- attention branch: x + attna(lna(x)) ----------------
    xn = _rmsnorm(x0, lna_w)

    # One fused lane-dense projection matmul (N,32)@(32,160) instead of five.
    proj = jnp.dot(xn, wpack_ref[...], preferred_element_type=jnp.float32)   # (N, 5D)
    q_lin = proj[:, 0 * DIMS:1 * DIMS]      # already * scale^2
    q_half = proj[:, 1 * DIMS:2 * DIMS]     # already * scale^2
    k_lin = proj[:, 2 * DIMS:3 * DIMS]
    k_half = proj[:, 3 * DIMS:4 * DIMS]
    v = proj[:, 4 * DIMS:5 * DIMS] + bv

    # RoPE by linearity (no in-kernel concats / rolls):
    #   rotary(q) = (xn@Wq)*cos + (xn@rh(Wq))*sin + rotary(bq)
    # scale^2 folded into the q-side weights/bias table; k stays unscaled so the
    # zero-token exact-equality check sees the same values as the reference.
    cosT = cos_ref[...][None]               # (1, T, D) broadcast over BB
    sinT = sin_ref[...][None]
    qbT = qb_ref[...][None]

    q3 = (q_lin.reshape(BB, T, DIMS) * cosT
          + q_half.reshape(BB, T, DIMS) * sinT + qbT)                        # (BB, T, D)
    k3 = (k_lin.reshape(BB, T, DIMS) * cosT
          + k_half.reshape(BB, T, DIMS) * sinT)                              # (BB, T, D)
    v3 = v.reshape(BB, T, DIMS)

    # Multiplicative causal mask generated in-kernel (1 on/below diag, 0 above).
    row = lax.broadcasted_iota(jnp.int32, (T, T), 0)
    col = lax.broadcasted_iota(jnp.int32, (T, T), 1)
    causal = (row >= col).astype(jnp.float32)[None]                          # (1, T, T)

    # Per-head score matmuls (MXU has slack); one batched softmax across heads.
    scores = []
    for h in range(HEAD):                                   # static, unrolled
        sl = slice(h * HEAD_DIM, (h + 1) * HEAD_DIM)
        qh = q3[:, :, sl]                                   # (BB, T, hd)
        kh = k3[:, :, sl]
        # "zero-token" scaling: keys whose post-rotary element 0 is exactly 0
        # get their score column scaled by zero_factor (applied to key rows,
        # equivalent to scaling the qk columns).
        zcol = jnp.where(kh[:, :, 0:1] == 0.0, zero_factor, 1.0)   # (BB, T, 1)
        s = jnp.einsum('btd,bsd->bts', qh, kh * zcol,
                       preferred_element_type=jnp.float32)          # (BB, T, T)
        scores.append(s * causal)            # multiplicative (0, not -inf) mask

    s_all = jnp.concatenate(scores, axis=0)                 # (HEAD*BB, T, T)
    m = jnp.max(s_all, axis=-1, keepdims=True)
    e = jnp.exp(s_all - m)
    w_all = e * pl.reciprocal(jnp.sum(e, axis=-1, keepdims=True), approx=True)

    head_outs = []
    for h in range(HEAD):
        sl = slice(h * HEAD_DIM, (h + 1) * HEAD_DIM)
        wh = w_all[h * BB:(h + 1) * BB]                     # (BB, T, T)
        head_outs.append(jnp.einsum('bts,bsd->btd', wh, v3[:, :, sl],
                                    preferred_element_type=jnp.float32))

    # Single output projection on the re-concatenated heads; bias added once.
    attn = jnp.concatenate(head_outs, axis=-1).reshape(N, DIMS)
    attn = jnp.dot(attn, wo_t_ref[...], preferred_element_type=jnp.float32) + bo

    x1 = x0 + attn

    # ---------------- MLP branch: x + mlp(lnc(x)) ----------------
    xn2 = _rmsnorm(x1, lnc_w)
    h1 = jnp.dot(xn2, w1_t_ref[...], preferred_element_type=jnp.float32) + b1
    h1 = jnp.maximum(h1, 0.0)                               # ReLU (act='relu')
    mlp_out = jnp.dot(h1, w2_t_ref[...], preferred_element_type=jnp.float32) + b2

    # final residual with the original input
    out_ref[0] = x1 + mlp_out + x0


# -----------------------------------------------------------------------------
# Wrapper
# -----------------------------------------------------------------------------
def rope_tables(T, head_dim, theta=10000.0):
    pos = jnp.arange(T, dtype=jnp.float32)
    inv_freq = 1.0 / (theta ** (jnp.arange(0, head_dim, 2, dtype=jnp.float32) / head_dim))
    ang = pos[:, None] * inv_freq[None, :]                 # (T, hd/2)
    cos = jnp.concatenate([jnp.cos(ang), jnp.cos(ang)], axis=-1)
    sin = jnp.concatenate([jnp.sin(ang), jnp.sin(ang)], axis=-1)
    return cos.astype(jnp.float32), sin.astype(jnp.float32)


def _rotate_half_cols(w):
    # rotate_half applied to the *output* columns (last axis), per head:
    #   rotate_half(x @ W) == x @ rotate_half_cols(W)
    lead = w.shape[:-1]
    w3 = w.reshape(*lead, HEAD, HEAD_DIM)
    h = HEAD_DIM // 2
    w_rh = jnp.concatenate([-w3[..., h:], w3[..., :h]], axis=-1)
    return w_rh.reshape(*lead, DIMS)


def _pick_num_blocks(B, T):
    # NB=2 only when there are actually two TensorCores to feed (v7x) AND each
    # block still has enough rows that the split isn't pure per-step overhead.
    # On v5e/v6e (single TC) an extra grid step is a serial loop: ~0.35 us of
    # overhead plus half the matmul M-dimension for nothing.
    two_tc = False
    try:
        kind = jax.devices()[0].device_kind.lower()
        two_tc = "v7" in kind
    except Exception:
        pass
    if two_tc and B % 2 == 0 and (B // 2) * T >= 256:
        return 2
    return 1


@jax.jit
def residual_forward(x, params):
    B, T, D = x.shape
    assert D == DIMS
    NB = _pick_num_blocks(B, T)
    BB = B // NB
    N = BB * T

    scale2 = float(HEAD_DIM) ** (-0.5)                     # == scale * scale

    cos_t, sin_t = rope_tables(T, HEAD_DIM)                # (T, hd)
    cosF = jnp.tile(cos_t, (1, HEAD))                      # (T, D) head-tiled
    sinF = jnp.tile(sin_t, (1, HEAD))

    # q-side weights carry scale^2; k-side stays unscaled (zero-token check).
    wq_t = params["wq"].T * scale2
    wq_rh_t = _rotate_half_cols(params["wq"].T) * scale2
    wk_t = params["wk"].T
    wk_rh_t = _rotate_half_cols(wk_t)
    wv_t = params["wv"].T
    wpack = jnp.concatenate([wq_t, wq_rh_t, wk_t, wk_rh_t, wv_t], axis=1)   # (D, 5D)

    bq = params["bq"]
    bq_rh = _rotate_half_cols(bq)
    # rotary(q-bias) with the qk scale folded in, per position.
    qb_rope = (bq[None, :] * cosF + bq_rh[None, :] * sinF) * scale2         # (T, D)

    # Pack the six small vectors into a single (8, 128) slab -> one DMA.
    def pad128(v):
        return jnp.pad(v, (0, 128 - v.shape[0]))
    vecs = jnp.stack([
        pad128(params["bv"]),
        pad128(params["bo"]),
        pad128(params["lna_w"]),
        pad128(params["lnc_w"]),
        pad128(params["b2"]),
        pad128(params["b1"]),                 # MLP == 128, no padding
        jnp.zeros((128,), jnp.float32),
        jnp.zeros((128,), jnp.float32),
    ], axis=0)                                # (8, 128)

    zero_factor = jnp.clip(jax.nn.softplus(params["factor"]), 1e-5, 0.1)
    zero_factor = zero_factor.reshape(1).astype(jnp.float32)

    args = (
        zero_factor,
        x.reshape(NB, N, D),
        cosF, sinF, qb_rope,
        wpack,
        params["wo"].T,
        params["w1"].T,
        params["w2"].T,
        vecs,
    )

    def fs(shape):
        n = len(shape)
        return pl.BlockSpec(shape, lambda i, n=n: (0,) * n)

    in_specs = [
        pl.BlockSpec(memory_space=pltpu.MemorySpace.SMEM),      # zero_factor scalar
        pl.BlockSpec((1, N, D), lambda i: (i, 0, 0)),           # x block (BB batches)
        fs((T, D)), fs((T, D)),                                 # cos, sin (shared q/k)
        fs((T, D)),                                             # qb_rope
        fs((D, 5 * D)),                                         # packed projection weights
        fs((D, D)),                                             # WoT
        fs((D, MLP)),                                           # W1T
        fs((MLP, D)),                                           # W2T
        fs((8, 128)),                                           # packed biases / norm weights
    ]

    out = pl.pallas_call(
        functools.partial(residual_kernel, BB=BB, T=T),
        out_shape=jax.ShapeDtypeStruct((NB, N, D), jnp.float32),
        grid_spec=pltpu.PrefetchScalarGridSpec(
            num_scalar_prefetch=0,
            grid=(NB,),
            in_specs=in_specs,
            out_specs=pl.BlockSpec((1, N, D), lambda i: (i, 0, 0)),
        ),
        compiler_params=pltpu.CompilerParams(
            dimension_semantics=("parallel",),
            # Tiny footprint here; 32 MiB is within the scoped budget of
            # v5e/v6e/v7x.  Re-derive BB against 64 MiB/TC if T/B are scaled up
            # on v7x.
            vmem_limit_bytes=32 * 1024 * 1024,
        ),
    )(*args)
    return out.reshape(B, T, D)


# -----------------------------------------------------------------------------
# Pure-JAX reference (mirrors the PyTorch forward) for a correctness check
# -----------------------------------------------------------------------------
def reference_forward(x, p):
    B, T, D = x.shape
    cos, sin = rope_tables(T, HEAD_DIM)
    zero_factor = jnp.clip(jax.nn.softplus(p["factor"]), 1e-5, 0.1)

    def rms(t, w):
        return t * lax.rsqrt(jnp.mean(t * t, -1, keepdims=True) + EPS) * w

    def rot(t):  # (B, H, T, hd)
        h = t.shape[-1] // 2
        rh = jnp.concatenate([-t[..., h:], t[..., :h]], -1)
        return t * cos + rh * sin

    xn = rms(x, p["lna_w"])
    q = xn @ p["wq"].T + p["bq"]
    k = xn @ p["wk"].T
    v = xn @ p["wv"].T + p["bv"]

    def split(t):
        return t.reshape(B, T, HEAD, HEAD_DIM).transpose(0, 2, 1, 3)

    q, k, v = split(q), split(k), split(v)
    q, k = rot(q), rot(k)
    scale = HEAD_DIM ** (-0.25)
    qk = (q * scale) @ jnp.swapaxes(k * scale, -1, -2)
    causal = jnp.where(jnp.triu(jnp.ones((T, T)), 1) == 1, 0.0, 1.0)
    token_ids = k[..., 0]
    scaled_zero = jnp.where(token_ids == 0.0, zero_factor, 1.0)
    qk = qk * (causal[None, None] * scaled_zero[:, :, None, :])
    w = jax.nn.softmax(qk, axis=-1)
    o = (w @ v).transpose(0, 2, 1, 3).reshape(B, T, D)
    attn = o @ p["wo"].T + p["bo"]

    x1 = x + attn
    xn2 = rms(x1, p["lnc_w"])
    h1 = jnp.maximum(xn2 @ p["w1"].T + p["b1"], 0.0)
    mlp = h1 @ p["w2"].T + p["b2"]
    return x1 + mlp + x


# -----------------------------------------------------------------------------
# Main
# -----------------------------------------------------------------------------
def init_params(key):
    ks = jax.random.split(key, 8)
    s = 0.05
    return {
        "wq": jax.random.normal(ks[0], (DIMS, DIMS), jnp.float32) * s,
        "bq": jax.random.normal(ks[1], (DIMS,), jnp.float32) * s,
        "wk": jax.random.normal(ks[2], (DIMS, DIMS), jnp.float32) * s,
        "wv": jax.random.normal(ks[3], (DIMS, DIMS), jnp.float32) * s,
        "bv": jnp.zeros((DIMS,), jnp.float32),
        "wo": jax.random.normal(ks[4], (DIMS, DIMS), jnp.float32) * s,
        "bo": jnp.zeros((DIMS,), jnp.float32),
        "lna_w": jnp.ones((DIMS,), jnp.float32),
        "lnc_w": jnp.ones((DIMS,), jnp.float32),
        "w1": jax.random.normal(ks[5], (MLP, DIMS), jnp.float32) * s,
        "b1": jax.random.normal(ks[6], (MLP,), jnp.float32) * s,
        "w2": jax.random.normal(ks[7], (DIMS, MLP), jnp.float32) * s,
        "b2": jnp.zeros((DIMS,), jnp.float32),
        "factor": jnp.asarray(0.001, jnp.float32),
    }


if __name__ == "__main__":
    key = jax.random.PRNGKey(0)
    k_x, k_p = jax.random.split(key)
    B, T = 2, 8
    x = jax.random.normal(k_x, (B, T, DIMS), jnp.float32)
    params = init_params(k_p)

    out = jax.block_until_ready(residual_forward(x, params))

    ref = reference_forward(x, params)
    assert out.shape == (B, T, DIMS)
    assert jnp.allclose(out, ref, rtol=1e-3, atol=1e-3), (
        float(jnp.max(jnp.abs(out - ref))))

    print("KERNEL_OK")
</pallas_src>

<mosaic_0001>
module attributes {stable_mosaic.version = 11 : i64} {
  func.func @residual_kernel(%arg0: i32, %arg1: memref<1xf32, #tpu.memory_space<smem>>, %arg2: memref<1x16x32xf32, #tpu.memory_space<vmem>>, %arg3: memref<8x32xf32, #tpu.memory_space<vmem>>, %arg4: memref<8x32xf32, #tpu.memory_space<vmem>>, %arg5: memref<8x32xf32, #tpu.memory_space<vmem>>, %arg6: memref<32x160xf32, #tpu.memory_space<vmem>>, %arg7: memref<32x32xf32, #tpu.memory_space<vmem>>, %arg8: memref<32x128xf32, #tpu.memory_space<vmem>>, %arg9: memref<128x32xf32, #tpu.memory_space<vmem>>, %arg10: memref<8x128xf32, #tpu.memory_space<vmem>>, %arg11: memref<1x16x32xf32, #tpu.memory_space<vmem>>) attributes {dimension_semantics = [#tpu.dimension_semantics<parallel>], iteration_bounds = array<i64: 1>, scalar_prefetch = 0 : i64, scratch_operands = 0 : i64, tpu.core_type = #tpu.core_type<tc>, window_params = [{transform_indices = @transform_0, window_bounds = array<i64: 1>}, {transform_indices = @transform_1, window_bounds = array<i64: 1, 16, 32>}, {pipeline_mode = #tpu.pipeline_mode<synchronous>, transform_indices = @transform_2, window_bounds = array<i64: 8, 32>}, {pipeline_mode = #tpu.pipeline_mode<synchronous>, transform_indices = @transform_3, window_bounds = array<i64: 8, 32>}, {pipeline_mode = #tpu.pipeline_mode<synchronous>, transform_indices = @transform_4, window_bounds = array<i64: 8, 32>}, {pipeline_mode = #tpu.pipeline_mode<synchronous>, transform_indices = @transform_5, window_bounds = array<i64: 32, 160>}, {pipeline_mode = #tpu.pipeline_mode<synchronous>, transform_indices = @transform_6, window_bounds = array<i64: 32, 32>}, {pipeline_mode = #tpu.pipeline_mode<synchronous>, transform_indices = @transform_7, window_bounds = array<i64: 32, 128>}, {pipeline_mode = #tpu.pipeline_mode<synchronous>, transform_indices = @transform_8, window_bounds = array<i64: 128, 32>}, {pipeline_mode = #tpu.pipeline_mode<synchronous>, transform_indices = @transform_9, window_bounds = array<i64: 8, 128>}, {transform_indices = @transform_10, window_bounds = array<i64: 1, 16, 32>}]} {
    %c0 = arith.constant 0 : index
    %c0_0 = arith.constant 0 : index
    %c0_1 = arith.constant 0 : index
    %0 = vector.load %arg2[%c0, %c0_0, %c0_1] : memref<1x16x32xf32, #tpu.memory_space<vmem>>, vector<1x16x32xf32>
    %1 = vector.shape_cast %0 : vector<1x16x32xf32> to vector<16x32xf32>
    %c0_2 = arith.constant 0 : index
    %2 = memref.load %arg1[%c0_2] : memref<1xf32, #tpu.memory_space<smem>>
    %c0_3 = arith.constant 0 : index
    %c0_4 = arith.constant 0 : index
    %3 = vector.load %arg10[%c0_3, %c0_4] : memref<8x128xf32, #tpu.memory_space<vmem>>, vector<8x128xf32>
    %4 = vector.extract_strided_slice %3 {offsets = [0, 0], sizes = [1, 32], strides = [1, 1]} : vector<8x128xf32> to vector<1x32xf32>
    %5 = vector.extract_strided_slice %3 {offsets = [1, 0], sizes = [1, 32], strides = [1, 1]} : vector<8x128xf32> to vector<1x32xf32>
    %6 = vector.extract_strided_slice %3 {offsets = [2, 0], sizes = [1, 32], strides = [1, 1]} : vector<8x128xf32> to vector<1x32xf32>
    %7 = vector.extract_strided_slice %3 {offsets = [3, 0], sizes = [1, 32], strides = [1, 1]} : vector<8x128xf32> to vector<1x32xf32>
    %8 = vector.extract_strided_slice %3 {offsets = [4, 0], sizes = [1, 32], strides = [1, 1]} : vector<8x128xf32> to vector<1x32xf32>
    %9 = vector.extract_strided_slice %3 {offsets = [5, 0], sizes = [1, 128], strides = [1, 1]} : vector<8x128xf32> to vector<1x128xf32>
    %10 = arith.mulf %1, %1 : vector<16x32xf32>
    %cst = arith.constant dense<0.000000e+00> : vector<16xf32>
    %11 = vector.multi_reduction <add>, %10, %cst [1] : vector<16x32xf32> to vector<16xf32>
    %12 = vector.shape_cast %11 : vector<16xf32> to vector<16x1xf32>
    %cst_5 = arith.constant 3.200000e+01 : f32
    %13 = vector.broadcast %cst_5 : f32 to vector<16x1xf32>
    %14 = arith.divf %12, %13 : vector<16x1xf32>
    %cst_6 = arith.constant 9.99999993E-9 : f32
    %15 = vector.broadcast %cst_6 : f32 to vector<16x1xf32>
    %16 = arith.addf %14, %15 : vector<16x1xf32>
    %17 = math.rsqrt %16 : vector<16x1xf32>
    %18 = vector.broadcast %17 : vector<16x1xf32> to vector<16x32xf32>
    %19 = arith.mulf %1, %18 : vector<16x32xf32>
    %20 = vector.broadcast %6 : vector<1x32xf32> to vector<16x32xf32>
    %21 = arith.mulf %19, %20 : vector<16x32xf32>
    %c0_7 = arith.constant 0 : index
    %c0_8 = arith.constant 0 : index
    %22 = vector.load %arg6[%c0_7, %c0_8] : memref<32x160xf32, #tpu.memory_space<vmem>>, vector<32x160xf32>
    %cst_9 = arith.constant dense<0.000000e+00> : vector<16x160xf32>
    %23 = tpu.matmul %21, %22, %cst_9 {dimension_numbers = #tpu.dot_dimension_numbers<[1], [0], [0], [1], [0, 0, 1, 1], [], []>} : vector<16x32xf32>, vector<32x160xf32>, vector<16x160xf32> -> vector<16x160xf32>
    %24 = vector.extract_strided_slice %23 {offsets = [0, 0], sizes = [16, 32], strides = [1, 1]} : vector<16x160xf32> to vector<16x32xf32>
    %25 = vector.extract_strided_slice %23 {offsets = [0, 32], sizes = [16, 32], strides = [1, 1]} : vector<16x160xf32> to vector<16x32xf32>
    %26 = vector.extract_strided_slice %23 {offsets = [0, 64], sizes = [16, 32], strides = [1, 1]} : vector<16x160xf32> to vector<16x32xf32>
    %27 = vector.extract_strided_slice %23 {offsets = [0, 96], sizes = [16, 32], strides = [1, 1]} : vector<16x160xf32> to vector<16x32xf32>
    %28 = vector.extract_strided_slice %23 {offsets = [0, 128], sizes = [16, 32], strides = [1, 1]} : vector<16x160xf32> to vector<16x32xf32>
    %29 = vector.broadcast %4 : vector<1x32xf32> to vector<16x32xf32>
    %30 = arith.addf %28, %29 : vector<16x32xf32>
    %c0_10 = arith.constant 0 : index
    %c0_11 = arith.constant 0 : index
    %31 = vector.load %arg3[%c0_10, %c0_11] : memref<8x32xf32, #tpu.memory_space<vmem>>, vector<8x32xf32>
    %32 = vector.shape_cast %31 : vector<8x32xf32> to vector<1x8x32xf32>
    %c0_12 = arith.constant 0 : index
    %c0_13 = arith.constant 0 : index
    %33 = vector.load %arg4[%c0_12, %c0_13] : memref<8x32xf32, #tpu.memory_space<vmem>>, vector<8x32xf32>
    %34 = vector.shape_cast %33 : vector<8x32xf32> to vector<1x8x32xf32>
    %c0_14 = arith.constant 0 : index
    %c0_15 = arith.constant 0 : index
    %35 = vector.load %arg5[%c0_14, %c0_15] : memref<8x32xf32, #tpu.memory_space<vmem>>, vector<8x32xf32>
    %36 = vector.shape_cast %35 : vector<8x32xf32> to vector<1x8x32xf32>
    %37 = vector.shape_cast %24 : vector<16x32xf32> to vector<2x8x32xf32>
    %38 = vector.broadcast %32 : vector<1x8x32xf32> to vector<2x8x32xf32>
    %39 = arith.mulf %37, %38 : vector<2x8x32xf32>
    %40 = vector.shape_cast %25 : vector<16x32xf32> to vector<2x8x32xf32>
    %41 = vector.broadcast %34 : vector<1x8x32xf32> to vector<2x8x32xf32>
    %42 = arith.mulf %40, %41 : vector<2x8x32xf32>
    %43 = arith.addf %39, %42 : vector<2x8x32xf32>
    %44 = vector.broadcast %36 : vector<1x8x32xf32> to vector<2x8x32xf32>
    %45 = arith.addf %43, %44 : vector<2x8x32xf32>
    %46 = vector.shape_cast %26 : vector<16x32xf32> to vector<2x8x32xf32>
    %47 = vector.broadcast %32 : vector<1x8x32xf32> to vector<2x8x32xf32>
    %48 = arith.mulf %46, %47 : vector<2x8x32xf32>
    %49 = vector.shape_cast %27 : vector<16x32xf32> to vector<2x8x32xf32>
    %50 = vector.broadcast %34 : vector<1x8x32xf32> to vector<2x8x32xf32>
    %51 = arith.mulf %49, %50 : vector<2x8x32xf32>
    %52 = arith.addf %48, %51 : vector<2x8x32xf32>
    %53 = vector.shape_cast %30 : vector<16x32xf32> to vector<2x8x32xf32>
    %54 = tpu.iota {dimensions = array<i32: 0>} : vector<8x8xi32>
    %55 = tpu.iota {dimensions = array<i32: 1>} : vector<8x8xi32>
    %56 = arith.cmpi sge, %54, %55 : vector<8x8xi32>
    %57 = arith.extui %56 : vector<8x8xi1> to vector<8x8xi32>
    %58 = arith.sitofp %57 : vector<8x8xi32> to vector<8x8xf32>
    %59 = vector.shape_cast %58 : vector<8x8xf32> to vector<1x8x8xf32>
    %60 = vector.extract_strided_slice %45 {offsets = [0, 0, 0], sizes = [2, 8, 8], strides = [1, 1, 1]} : vector<2x8x32xf32> to vector<2x8x8xf32>
    %61 = vector.extract_strided_slice %52 {offsets = [0, 0, 0], sizes = [2, 8, 8], strides = [1, 1, 1]} : vector<2x8x32xf32> to vector<2x8x8xf32>
    %62 = vector.extract_strided_slice %61 {offsets = [0, 0, 0], sizes = [2, 8, 1], strides = [1, 1, 1]} : vector<2x8x8xf32> to vector<2x8x1xf32>
    %cst_16 = arith.constant 0.000000e+00 : f32
    %63 = vector.broadcast %cst_16 : f32 to vector<2x8x1xf32>
    %64 = arith.cmpf oeq, %62, %63 : vector<2x8x1xf32>
    %cst_17 = arith.constant 1.000000e+00 : f32
    %65 = vector.broadcast %2 : f32 to vector<2x8x1xf32>
    %66 = vector.broadcast %cst_17 : f32 to vector<2x8x1xf32>
    %67 = arith.select %64, %65, %66 : vector<2x8x1xi1>, vector<2x8x1xf32>
    %68 = vector.broadcast %67 : vector<2x8x1xf32> to vector<2x8x8xf32>
    %69 = arith.mulf %61, %68 : vector<2x8x8xf32>
    "tpu.trace_start"() <{level = 10 : i32, message = "btd,bsd->bts"}> : () -> ()
    %cst_18 = arith.constant dense<0.000000e+00> : vector<2x8x8xf32>
    %70 = tpu.matmul %60, %69, %cst_18 {dimension_numbers = #tpu.dot_dimension_numbers<[2], [2], [1], [1], [0, 0, 0, 1, 1, 1], [0], [0]>} : vector<2x8x8xf32>, vector<2x8x8xf32>, vector<2x8x8xf32> -> vector<2x8x8xf32>
    "tpu.trace_stop"() : () -> ()
    %71 = vector.broadcast %59 : vector<1x8x8xf32> to vector<2x8x8xf32>
    %72 = arith.mulf %70, %71 : vector<2x8x8xf32>
    %73 = vector.extract_strided_slice %45 {offsets = [0, 0, 8], sizes = [2, 8, 8], strides = [1, 1, 1]} : vector<2x8x32xf32> to vector<2x8x8xf32>
    %74 = vector.extract_strided_slice %52 {offsets = [0, 0, 8], sizes = [2, 8, 8], strides = [1, 1, 1]} : vector<2x8x32xf32> to vector<2x8x8xf32>
    %75 = vector.extract_strided_slice %74 {offsets = [0, 0, 0], sizes = [2, 8, 1], strides = [1, 1, 1]} : vector<2x8x8xf32> to vector<2x8x1xf32>
    %cst_19 = arith.constant 0.000000e+00 : f32
    %76 = vector.broadcast %cst_19 : f32 to vector<2x8x1xf32>
    %77 = arith.cmpf oeq, %75, %76 : vector<2x8x1xf32>
    %cst_20 = arith.constant 1.000000e+00 : f32
    %78 = vector.broadcast %2 : f32 to vector<2x8x1xf32>
    %79 = vector.broadcast %cst_20 : f32 to vector<2x8x1xf32>
    %80 = arith.select %77, %78, %79 : vector<2x8x1xi1>, vector<2x8x1xf32>
    %81 = vector.broadcast %80 : vector<2x8x1xf32> to vector<2x8x8xf32>
    %82 = arith.mulf %74, %81 : vector<2x8x8xf32>
    "tpu.trace_start"() <{level = 10 : i32, message = "btd,bsd->bts"}> : () -> ()
    %cst_21 = arith.constant dense<0.000000e+00> : vector<2x8x8xf32>
    %83 = tpu.matmul %73, %82, %cst_21 {dimension_numbers = #tpu.dot_dimension_numbers<[2], [2], [1], [1], [0, 0, 0, 1, 1, 1], [0], [0]>} : vector<2x8x8xf32>, vector<2x8x8xf32>, vector<2x8x8xf32> -> vector<2x8x8xf32>
    "tpu.trace_stop"() : () -> ()
    %84 = vector.broadcast %59 : vector<1x8x8xf32> to vector<2x8x8xf32>
    %85 = arith.mulf %83, %84 : vector<2x8x8xf32>
    %86 = vector.extract_strided_slice %45 {offsets = [0, 0, 16], sizes = [2, 8, 8], strides = [1, 1, 1]} : vector<2x8x32xf32> to vector<2x8x8xf32>
    %87 = vector.extract_strided_slice %52 {offsets = [0, 0, 16], sizes = [2, 8, 8], strides = [1, 1, 1]} : vector<2x8x32xf32> to vector<2x8x8xf32>
    %88 = vector.extract_strided_slice %87 {offsets = [0, 0, 0], sizes = [2, 8, 1], strides = [1, 1, 1]} : vector<2x8x8xf32> to vector<2x8x1xf32>
    %cst_22 = arith.constant 0.000000e+00 : f32
    %89 = vector.broadcast %cst_22 : f32 to vector<2x8x1xf32>
    %90 = arith.cmpf oeq, %88, %89 : vector<2x8x1xf32>
    %cst_23 = arith.constant 1.000000e+00 : f32
    %91 = vector.broadcast %2 : f32 to vector<2x8x1xf32>
    %92 = vector.broadcast %cst_23 : f32 to vector<2x8x1xf32>
    %93 = arith.select %90, %91, %92 : vector<2x8x1xi1>, vector<2x8x1xf32>
    %94 = vector.broadcast %93 : vector<2x8x1xf32> to vector<2x8x8xf32>
    %95 = arith.mulf %87, %94 : vector<2x8x8xf32>
    "tpu.trace_start"() <{level = 10 : i32, message = "btd,bsd->bts"}> : () -> ()
    %cst_24 = arith.constant dense<0.000000e+00> : vector<2x8x8xf32>
    %96 = tpu.matmul %86, %95, %cst_24 {dimension_numbers = #tpu.dot_dimension_numbers<[2], [2], [1], [1], [0, 0, 0, 1, 1, 1], [0], [0]>} : vector<2x8x8xf32>, vector<2x8x8xf32>, vector<2x8x8xf32> -> vector<2x8x8xf32>
    "tpu.trace_stop"() : () -> ()
    %97 = vector.broadcast %59 : vector<1x8x8xf32> to vector<2x8x8xf32>
    %98 = arith.mulf %96, %97 : vector<2x8x8xf32>
    %99 = vector.extract_strided_slice %45 {offsets = [0, 0, 24], sizes = [2, 8, 8], strides = [1, 1, 1]} : vector<2x8x32xf32> to vector<2x8x8xf32>
    %100 = vector.extract_strided_slice %52 {offsets = [0, 0, 24], sizes = [2, 8, 8], strides = [1, 1, 1]} : vector<2x8x32xf32> to vector<2x8x8xf32>
    %101 = vector.extract_strided_slice %100 {offsets = [0, 0, 0], sizes = [2, 8, 1], strides = [1, 1, 1]} : vector<2x8x8xf32> to vector<2x8x1xf32>
    %cst_25 = arith.constant 0.000000e+00 : f32
    %102 = vector.broadcast %cst_25 : f32 to vector<2x8x1xf32>
    %103 = arith.cmpf oeq, %101, %102 : vector<2x8x1xf32>
    %cst_26 = arith.constant 1.000000e+00 : f32
    %104 = vector.broadcast %2 : f32 to vector<2x8x1xf32>
    %105 = vector.broadcast %cst_26 : f32 to vector<2x8x1xf32>
    %106 = arith.select %103, %104, %105 : vector<2x8x1xi1>, vector<2x8x1xf32>
    %107 = vector.broadcast %106 : vector<2x8x1xf32> to vector<2x8x8xf32>
    %108 = arith.mulf %100, %107 : vector<2x8x8xf32>
    "tpu.trace_start"() <{level = 10 : i32, message = "btd,bsd->bts"}> : () -> ()
    %cst_27 = arith.constant dense<0.000000e+00> : vector<2x8x8xf32>
    %109 = tpu.matmul %99, %108, %cst_27 {dimension_numbers = #tpu.dot_dimension_numbers<[2], [2], [1], [1], [0, 0, 0, 1, 1, 1], [0], [0]>} : vector<2x8x8xf32>, vector<2x8x8xf32>, vector<2x8x8xf32> -> vector<2x8x8xf32>
    "tpu.trace_stop"() : () -> ()
    %110 = vector.broadcast %59 : vector<1x8x8xf32> to vector<2x8x8xf32>
    %111 = arith.mulf %109, %110 : vector<2x8x8xf32>
    %112 = tpu.concatenate %72, %85, %98, %111 in 0 : vector<2x8x8xf32>, vector<2x8x8xf32>, vector<2x8x8xf32>, vector<2x8x8xf32> -> vector<8x8x8xf32>
    %cst_28 = arith.constant dense<0xFF800000> : vector<8x8xf32>
    %113 = vector.multi_reduction <maximumf>, %112, %cst_28 [2] : vector<8x8x8xf32> to vector<8x8xf32>
    %114 = vector.shape_cast %113 : vector<8x8xf32> to vector<8x8x1xf32>
    %115 = vector.broadcast %114 : vector<8x8x1xf32> to vector<8x8x8xf32>
    %116 = arith.subf %112, %115 : vector<8x8x8xf32>
    %117 = math.exp %116 : vector<8x8x8xf32>
    %cst_29 = arith.constant dense<0.000000e+00> : vector<8x8xf32>
    %118 = vector.multi_reduction <add>, %117, %cst_29 [2] : vector<8x8x8xf32> to vector<8x8xf32>
    %119 = vector.shape_cast %118 : vector<8x8xf32> to vector<8x8x1xf32>
    %120 = tpu.reciprocal %119 {approx = true} : vector<8x8x1xf32> -> vector<8x8x1xf32>
    %121 = vector.broadcast %120 : vector<8x8x1xf32> to vector<8x8x8xf32>
    %122 = arith.mulf %117, %121 : vector<8x8x8xf32>
    %123 = vector.extract_strided_slice %122 {offsets = [0, 0, 0], sizes = [2, 8, 8], strides = [1, 1, 1]} : vector<8x8x8xf32> to vector<2x8x8xf32>
    %124 = vector.extract_strided_slice %53 {offsets = [0, 0, 0], sizes = [2, 8, 8], strides = [1, 1, 1]} : vector<2x8x32xf32> to vector<2x8x8xf32>
    "tpu.trace_start"() <{level = 10 : i32, message = "bts,bsd->btd"}> : () -> ()
    %cst_30 = arith.constant dense<0.000000e+00> : vector<2x8x8xf32>
    %125 = tpu.matmul %123, %124, %cst_30 {dimension_numbers = #tpu.dot_dimension_numbers<[2], [1], [1], [2], [0, 0, 0, 1, 1, 2], [0], [0]>} : vector<2x8x8xf32>, vector<2x8x8xf32>, vector<2x8x8xf32> -> vector<2x8x8xf32>
    "tpu.trace_stop"() : () -> ()
    %126 = vector.extract_strided_slice %122 {offsets = [2, 0, 0], sizes = [2, 8, 8], strides = [1, 1, 1]} : vector<8x8x8xf32> to vector<2x8x8xf32>
    %127 = vector.extract_strided_slice %53 {offsets = [0, 0, 8], sizes = [2, 8, 8], strides = [1, 1, 1]} : vector<2x8x32xf32> to vector<2x8x8xf32>
    "tpu.trace_start"() <{level = 10 : i32, message = "bts,bsd->btd"}> : () -> ()
    %cst_31 = arith.constant dense<0.000000e+00> : vector<2x8x8xf32>
    %128 = tpu.matmul %126, %127, %cst_31 {dimension_numbers = #tpu.dot_dimension_numbers<[2], [1], [1], [2], [0, 0, 0, 1, 1, 2], [0], [0]>} : vector<2x8x8xf32>, vector<2x8x8xf32>, vector<2x8x8xf32> -> vector<2x8x8xf32>
    "tpu.trace_stop"() : () -> ()
    %129 = vector.extract_strided_slice %122 {offsets = [4, 0, 0], sizes = [2, 8, 8], strides = [1, 1, 1]} : vector<8x8x8xf32> to vector<2x8x8xf32>
    %130 = vector.extract_strided_slice %53 {offsets = [0, 0, 16], sizes = [2, 8, 8], strides = [1, 1, 1]} : vector<2x8x32xf32> to vector<2x8x8xf32>
    "tpu.trace_start"() <{level = 10 : i32, message = "bts,bsd->btd"}> : () -> ()
    %cst_32 = arith.constant dense<0.000000e+00> : vector<2x8x8xf32>
    %131 = tpu.matmul %129, %130, %cst_32 {dimension_numbers = #tpu.dot_dimension_numbers<[2], [1], [1], [2], [0, 0, 0, 1, 1, 2], [0], [0]>} : vector<2x8x8xf32>, vector<2x8x8xf32>, vector<2x8x8xf32> -> vector<2x8x8xf32>
    "tpu.trace_stop"() : () -> ()
    %132 = vector.extract_strided_slice %122 {offsets = [6, 0, 0], sizes = [2, 8, 8], strides = [1, 1, 1]} : vector<8x8x8xf32> to vector<2x8x8xf32>
    %133 = vector.extract_strided_slice %53 {offsets = [0, 0, 24], sizes = [2, 8, 8], strides = [1, 1, 1]} : vector<2x8x32xf32> to vector<2x8x8xf32>
    "tpu.trace_start"() <{level = 10 : i32, message = "bts,bsd->btd"}> : () -> ()
    %cst_33 = arith.constant dense<0.000000e+00> : vector<2x8x8xf32>
    %134 = tpu.matmul %132, %133, %cst_33 {dimension_numbers = #tpu.dot_dimension_numbers<[2], [1], [1], [2], [0, 0, 0, 1, 1, 2], [0], [0]>} : vector<2x8x8xf32>, vector<2x8x8xf32>, vector<2x8x8xf32> -> vector<2x8x8xf32>
    "tpu.trace_stop"() : () -> ()
    %135 = tpu.concatenate %125, %128, %131, %134 in 2 : vector<2x8x8xf32>, vector<2x8x8xf32>, vector<2x8x8xf32>, vector<2x8x8xf32> -> vector<2x8x32xf32>
    %136 = vector.shape_cast %135 : vector<2x8x32xf32> to vector<16x32xf32>
    %c0_34 = arith.constant 0 : index
    %c0_35 = arith.constant 0 : index
    %137 = vector.load %arg7[%c0_34, %c0_35] : memref<32x32xf32, #tpu.memory_space<vmem>>, vector<32x32xf32>
    %cst_36 = arith.constant dense<0.000000e+00> : vector<16x32xf32>
    %138 = tpu.matmul %136, %137, %cst_36 {dimension_numbers = #tpu.dot_dimension_numbers<[1], [0], [0], [1], [0, 0, 1, 1], [], []>} : vector<16x32xf32>, vector<32x32xf32>, vector<16x32xf32> -> vector<16x32xf32>
    %139 = vector.broadcast %5 : vector<1x32xf32> to vector<16x32xf32>
    %140 = arith.addf %138, %139 : vector<16x32xf32>
    %141 = arith.addf %1, %140 : vector<16x32xf32>
    %142 = arith.mulf %141, %141 : vector<16x32xf32>
    %cst_37 = arith.constant dense<0.000000e+00> : vector<16xf32>
    %143 = vector.multi_reduction <add>, %142, %cst_37 [1] : vector<16x32xf32> to vector<16xf32>
    %144 = vector.shape_cast %143 : vector<16xf32> to vector<16x1xf32>
    %cst_38 = arith.constant 3.200000e+01 : f32
    %145 = vector.broadcast %cst_38 : f32 to vector<16x1xf32>
    %146 = arith.divf %144, %145 : vector<16x1xf32>
    %cst_39 = arith.constant 9.99999993E-9 : f32
    %147 = vector.broadcast %cst_39 : f32 to vector<16x1xf32>
    %148 = arith.addf %146, %147 : vector<16x1xf32>
    %149 = math.rsqrt %148 : vector<16x1xf32>
    %150 = vector.broadcast %149 : vector<16x1xf32> to vector<16x32xf32>
    %151 = arith.mulf %141, %150 : vector<16x32xf32>
    %152 = vector.broadcast %7 : vector<1x32xf32> to vector<16x32xf32>
    %153 = arith.mulf %151, %152 : vector<16x32xf32>
    %c0_40 = arith.constant 0 : index
    %c0_41 = arith.constant 0 : index
    %154 = vector.load %arg8[%c0_40, %c0_41] : memref<32x128xf32, #tpu.memory_space<vmem>>, vector<32x128xf32>
    %cst_42 = arith.constant dense<0.000000e+00> : vector<16x128xf32>
    %155 = tpu.matmul %153, %154, %cst_42 {dimension_numbers = #tpu.dot_dimension_numbers<[1], [0], [0], [1], [0, 0, 1, 1], [], []>} : vector<16x32xf32>, vector<32x128xf32>, vector<16x128xf32> -> vector<16x128xf32>
    %156 = vector.broadcast %9 : vector<1x128xf32> to vector<16x128xf32>
    %157 = arith.addf %155, %156 : vector<16x128xf32>
    %cst_43 = arith.constant 0.000000e+00 : f32
    %158 = vector.broadcast %cst_43 : f32 to vector<16x128xf32>
    %159 = arith.maximumf %157, %158 : vector<16x128xf32>
    %c0_44 = arith.constant 0 : index
    %c0_45 = arith.constant 0 : index
    %160 = vector.load %arg9[%c0_44, %c0_45] : memref<128x32xf32, #tpu.memory_space<vmem>>, vector<128x32xf32>
    %cst_46 = arith.constant dense<0.000000e+00> : vector<16x32xf32>
    %161 = tpu.matmul %159, %160, %cst_46 {dimension_numbers = #tpu.dot_dimension_numbers<[1], [0], [0], [1], [0, 0, 1, 1], [], []>} : vector<16x128xf32>, vector<128x32xf32>, vector<16x32xf32> -> vector<16x32xf32>
    %162 = vector.broadcast %8 : vector<1x32xf32> to vector<16x32xf32>
    %163 = arith.addf %161, %162 : vector<16x32xf32>
    %164 = arith.addf %141, %163 : vector<16x32xf32>
    %165 = arith.addf %164, %1 : vector<16x32xf32>
    %c0_47 = arith.constant 0 : index
    %c0_48 = arith.constant 0 : index
    %c0_49 = arith.constant 0 : index
    %166 = vector.load %arg11[%c0_47, %c0_48, %c0_49] : memref<1x16x32xf32, #tpu.memory_space<vmem>>, vector<1x16x32xf32>
    %167 = vector.shape_cast %166 : vector<1x16x32xf32> to vector<16x32xf32>
    %168 = vector.shape_cast %165 : vector<16x32xf32> to vector<1x16x32xf32>
    tpu.vector_store %arg11[%c0_47, %c0_48, %c0_49], %168 {strides = array<i32>} : memref<1x16x32xf32, #tpu.memory_space<vmem>>, vector<1x16x32xf32>,
    return
  }
  func.func @transform_0(%arg0: i32) -> i32 {
    %c0_i32 = arith.constant 0 : i32
    %c0_i32_0 = arith.constant 0 : i32
    return %c0_i32 : i32
  }
  func.func @transform_1(%arg0: i32) -> (i32, i32, i32) {
    %c0_i32 = arith.constant 0 : i32
    %c0_i32_0 = arith.constant 0 : i32
    %c0_i32_1 = arith.constant 0 : i32
    return %arg0, %c0_i32, %c0_i32_0 : i32, i32, i32
  }
  func.func @transform_2(%arg0: i32) -> (i32, i32) {
    %c0_i32 = arith.constant 0 : i32
    %c0_i32_0 = arith.constant 0 : i32
    %c0_i32_1 = arith.constant 0 : i32
    return %c0_i32, %c0_i32_0 : i32, i32
  }
  func.func @transform_3(%arg0: i32) -> (i32, i32) {
    %c0_i32 = arith.constant 0 : i32
    %c0_i32_0 = arith.constant 0 : i32
    %c0_i32_1 = arith.constant 0 : i32
    return %c0_i32, %c0_i32_0 : i32, i32
  }
  func.func @transform_4(%arg0: i32) -> (i32, i32) {
    %c0_i32 = arith.constant 0 : i32
    %c0_i32_0 = arith.constant 0 : i32
    %c0_i32_1 = arith.constant 0 : i32
    return %c0_i32, %c0_i32_0 : i32, i32
  }
  func.func @transform_5(%arg0: i32) -> (i32, i32) {
    %c0_i32 = arith.constant 0 : i32
    %c0_i32_0 = arith.constant 0 : i32
    %c0_i32_1 = arith.constant 0 : i32
    return %c0_i32, %c0_i32_0 : i32, i32
  }
  func.func @transform_6(%arg0: i32) -> (i32, i32) {
    %c0_i32 = arith.constant 0 : i32
    %c0_i32_0 = arith.constant 0 : i32
    %c0_i32_1 = arith.constant 0 : i32
    return %c0_i32, %c0_i32_0 : i32, i32
  }
  func.func @transform_7(%arg0: i32) -> (i32, i32) {
    %c0_i32 = arith.constant 0 : i32
    %c0_i32_0 = arith.constant 0 : i32
    %c0_i32_1 = arith.constant 0 : i32
    return %c0_i32, %c0_i32_0 : i32, i32
  }
  func.func @transform_8(%arg0: i32) -> (i32, i32) {
    %c0_i32 = arith.constant 0 : i32
    %c0_i32_0 = arith.constant 0 : i32
    %c0_i32_1 = arith.constant 0 : i32
    return %c0_i32, %c0_i32_0 : i32, i32
  }
  func.func @transform_9(%arg0: i32) -> (i32, i32) {
    %c0_i32 = arith.constant 0 : i32
    %c0_i32_0 = arith.constant 0 : i32
    %c0_i32_1 = arith.constant 0 : i32
    return %c0_i32, %c0_i32_0 : i32, i32
  }
  func.func @transform_10(%arg0: i32) -> (i32, i32, i32) {
    %c0_i32 = arith.constant 0 : i32
    %c0_i32_0 = arith.constant 0 : i32
    %c0_i32_1 = arith.constant 0 : i32
    return %arg0, %c0_i32, %c0_i32_0 : i32, i32, i32
  }
}

</mosaic_0001>

<bundles_post_ra>
// kernel: tile.14
= control target key start
LH: loop header
LB: loop body
LE: loop exit
PB: predicated region body
PF: predicated region fallthrough
CT: control target
= control target key end

     0   :  { %vm36_vm0 = vcmask 1047556   ;;  %s81_s22 = smov 8   ;;  %s82_s23 = smov 16   ;;  %vm38_vm1 = vcmask 64512   ;;  %vm48_vm2 = vcmask 261312   ;;  %vm58_vm3 = vcmask 195712   ;;  %s133_s0 = inlined_call_operand.vmem [shape: f32[8,4,8], index: 0, kind: input, shape index: {}]   ;;  %s134_s1 = inlined_call_operand.vmem [shape: f32[8,32], index: 1, kind: output, shape index: {}]  }
   0x1   :  { %v70_v0 = vld [vmem:[%s133_s0 + $0x1c] sm:$0xf]  ;;  %v71_v1 = vld [vmem:[%s133_s0 + $0x18] sm:$0xf]  ;;  %v72_v2 = vld [vmem:[%s133_s0 + $0x14] sm:$0xf] }
   0x2   :  { %7 = vst [vmem:[#allocation0 + $0x38] sm:$0xf] %v70_v0  ;;  %v73_v3 = vld [vmem:[%s133_s0 + $0x10] sm:$0xf]  ;;  %v74_v4 = vld [vmem:[%s133_s0 + $0xc] sm:$0xf] }
   0x3   :  { %11 = vst [vmem:[#allocation0 + $0x30] sm:$0xf] %v71_v1  ;;  %v75_v5 = vld [vmem:[%s133_s0 + $0x8] sm:$0xf]  ;;  %v76_v6 = vld [vmem:[%s133_s0 + $0x4] sm:$0xf] }
   0x4   :  { %15 = vst [vmem:[#allocation0 + $0x28] sm:$0xf] %v72_v2  ;;  %v32_v7 = vld [vmem:[%s133_s0] sm:$0xf]  ;;  %s80_s0 = smov 24   ;;  %vm68_vm4 = vcmask 130112  }
   0x5   :  { %19 = vst [vmem:[#allocation0 + $0x20] sm:$0xf] %v73_v3 }
   0x6   :  { %23 = vst [vmem:[#allocation0 + $0x18] sm:$0xf] %v74_v4 }
   0x7   :  { %27 = vst [vmem:[#allocation0 + $0x10] sm:$0xf] %v75_v5 }
   0x8   :  { %31 = vst [vmem:[#allocation0 + $0x8] sm:$0xf] %v76_v6 }
   0x9   :  { %33 = vst [vmem:[#allocation0] sm:$0xf] %v32_v7 }
   0xc   :  { %v43_v8 = vld [vmem:[#allocation0 + $0x3] ss:$8 sm:$0xf0]   ;;  %v63_v9 = vld [vmem:[#allocation0 + $0x1] ss:$8 sm:$0xf0]  }
   0xd   :  { %v53_v15 = vld [vmem:[#allocation0 + $0x2] ss:$8 sm:$0xf0]   ;;  %v35_v18 = vld [vmem:[#allocation0] ss:$8 sm:$0xf0]  }
  0x10   :  { %v41_v10 = vld [vmem:[#allocation0 + $0x3] ss:$8 sm:$0xf]   ;;  %v61_v12 = vld [vmem:[#allocation0 + $0x1] ss:$8 sm:$0xf]  }
  0x11   :  { %v45_v11 = vsel %vm36_vm0, %v43_v8, %v41_v10  ;;  %v65_v13 = vsel %vm36_vm0, %v63_v9, %v61_v12  ;;  %v51_v14 = vld [vmem:[#allocation0 + $0x2] ss:$8 sm:$0xf]   ;;  %v34_v17 = vld [vmem:[#allocation0] ss:$8 sm:$0xf]  }
  0x12   :  { %46 = vrot.lane.b32.xlu0 %v45_v11, %s80_s0  ;;  %66 = vrot.lane.b32.xlu1 %v65_v13, %s81_s22  ;;  %v55_v16 = vsel %vm36_vm0, %v53_v15, %v51_v14  ;;  %v37_v19 = vsel %vm36_vm0, %v35_v18, %v34_v17 }
  0x13   :  { %39 = vst.msk [vmem:[%s134_s1] sm:$0xff] %vm38_vm1, %v37_v19  }
  0x1a   :  { %56 = vrot.lane.b32.xlu0 %v55_v16, %s82_s23 }
  0x84   :  { %v47_v20 = vpop.permute.xlu0 %46   ;;  %v67_v21 = vpop.permute.xlu1 %66  }
  0x85   :  { %49 = vst.msk [vmem:[%s134_s1] sm:$0xff] %vm48_vm2, %v47_v20  }
  0x8c   :  { %v57_v22 = vpop.permute.xlu0 %56  }
  0x8d   :  { %59 = vst.msk [vmem:[%s134_s1] sm:$0xff] %vm58_vm3, %v57_v22  }
  0x8e   :  { %69 = vst.msk [vmem:[%s134_s1] sm:$0xff] %vm68_vm4, %v67_v21  }

// kernel: mul.36
= control target key start
LH: loop header
LB: loop body
LE: loop exit
PB: predicated region body
PF: predicated region fallthrough
CT: control target
= control target key end

     0   :  { %s37_s8 = smov 8   ;;  %s38_s9 = smov 16   ;;  %vm7_vm0 = vcmask 64512   ;;  %vm13_vm1 = vcmask 261312   ;;  %vm19_vm2 = vcmask 195712   ;;  %vm25_vm3 = vcmask 130112   ;;  %s55_s0 = inlined_call_operand.vmem [shape: f32[4,8], index: 0, kind: input, shape index: {}]   ;;  %s56_s1 = inlined_call_operand.vmem [shape: f32[32], index: 1, kind: output, shape index: {}]  }
   0x1   :  { %v4_v0 = vld [vmem:[%s55_s0] sm:$0xf]  ;;  %s36_s0 = smov 24  }
   0x2   :  { %5 = vst [vmem:[#allocation1] sm:$0xf] %v4_v0 }
   0x9   :  { %v10_v1 = vld [vmem:[#allocation1 + $0x3] sm:$0x1]   ;;  %v22_v2 = vld [vmem:[#allocation1 + $0x1] sm:$0x1]   ;;  %v16_v3 = vld [vmem:[#allocation1 + $0x2] sm:$0x1]  }
   0xa   :  { %11 = vrot.lane.b32.xlu0 %v10_v1, %s36_s0  ;;  %23 = vrot.lane.b32.xlu1 %v22_v2, %s37_s8  ;;  %v6_v4 = vld [vmem:[#allocation1] sm:$0x1]  }
   0xb   :  { %8 = vst.msk [vmem:[#allocation0] sm:$0x1] %vm7_vm0, %v6_v4  }
  0x12   :  { %17 = vrot.lane.b32.xlu0 %v16_v3, %s38_s9 }
  0x7c   :  { %v12_v5 = vpop.permute.xlu0 %11   ;;  %v24_v6 = vpop.permute.xlu1 %23  }
  0x7d   :  { %14 = vst.msk [vmem:[#allocation0] sm:$0x1] %vm13_vm1, %v12_v5  }
  0x84   :  { %v18_v7 = vpop.permute.xlu0 %17  }
  0x85   :  { %20 = vst.msk [vmem:[#allocation0] sm:$0x1] %vm19_vm2, %v18_v7  }
  0x86   :  { %26 = vst.msk [vmem:[#allocation0] sm:$0x1] %vm25_vm3, %v24_v6  }
  0x8d   :  { %v29_v8 = vld [vmem:[#allocation0] sm:$0x1] }
  0x8e   :  { %32 = vst [vmem:[%s56_s1] sm:$0x1] %v29_v8 }

// kernel: residual_forward.1
= control target key start
LH: loop header
LB: loop body
LE: loop exit
PB: predicated region body
PF: predicated region fallthrough
CT: control target
= control target key end

     0   :  { %vm43_vm0 = vcmask 261120   ;;  %s1473_s0 = inlined_call_operand.<no memory space> [shape: f32[1], index: 0, kind: input, shape index: {}]   ;;  %s1474_s1 = inlined_call_operand.vmem [shape: f32[1,16,32], index: 1, kind: input, shape index: {}]   ;;  %s1475_s2 = inlined_call_operand.vmem [shape: f32[8,32], index: 2, kind: input, shape index: {}]   ;;  %s1476_s3 = inlined_call_operand.vmem [shape: f32[8,32], index: 3, kind: input, shape index: {}]   ;;  %s1477_s4 = inlined_call_operand.vmem [shape: f32[8,32], index: 4, kind: input, shape index: {}]   ;;  %s1478_s5 = inlined_call_operand.vmem [shape: f32[32,160], index: 5, kind: input, shape index: {}]   ;;  %s1479_s6 = inlined_call_operand.vmem [shape: f32[32,32], index: 6, kind: input, shape index: {}]   ;;  %s1480_s7 = inlined_call_operand.vmem [shape: f32[32,128], index: 7, kind: input, shape index: {}]   ;;  %s1481_s8 = inlined_call_operand.vmem [shape: f32[128,32], index: 8, kind: input, shape index: {}]   ;;  %s1482_s9 = inlined_call_operand.vmem [shape: f32[8,128], index: 9, kind: input, shape index: {}]   ;;  %s1483_s10 = inlined_call_operand.hbm [shape: f32[1,16,32], index: 10, kind: output, shape index: {}]  }
   0x1   :  { %v1194_v0 = vld [vmem:[%s1474_s1] sm:$0xff] }
   0x2   :  { %16 = vsyncpa [#allocation4], 0  ;;  %v41_v1 = vmul.f32 %v1194_v0, %v1194_v0  ;;  %v1201_v2 = vld [vmem:[%s1474_s1 + $0x8] sm:$0xff]  ;;  %v1116_v6 = vmov 32.0   ;;  %v92_v10 = vld [vmem:[%s1478_s5 + $0x30] sm:$0xff]  ;;  %s1117_s26 = smov 96   ;;  %v202_v63 = vstv %s1473_s0 }
   0x3   :  { %v42_v4 = vmul.f32 %v1201_v2, %v1201_v2  ;;  %1048 = vrcp.f32 %v1116_v6  ;;  %112 = vmatpush.msra.mxu1 %v92_v10  ;;  %v90_v11 = vld [vmem:[%s1478_s5 + $0x20] sm:$0xff]  ;;  %v88_v13 = vld [vmem:[%s1478_s5 + $0x10] sm:$0xff]  ;;  %s1118_s27 = smov 32   ;;  %v93_v21 = vld [vmem:[%s1478_s5 + $0x38] sm:$0xff]  ;;  %s1119_s13 = smov 64   ;;  %v1120_v57 = vmov 64  }
   0x4   :  { %v44_v3 = vsel %vm43_vm0, %v41_v1, 0.0  ;;  %v86_v14 = vld [vmem:[%s1478_s5] sm:$0xff]  ;;  %v91_v23 = vld [vmem:[%s1478_s5 + $0x28] sm:$0xff]  ;;  %v89_v24 = vld [vmem:[%s1478_s5 + $0x18] sm:$0xff]  ;;  %1036 = vset.pattern.permute.xlu1 %v1120_v57  ;;  %1038 = vset.pattern.permute.xlu2 %v1120_v57  ;;  %v1121_v58 = vmov 88   ;;  %s1124_s19 = smov 120  }
   0x5   :  { %45 = vadd.xlane.f32.xlu0 %v44_v3  ;;  %v47_v5 = vsel %vm43_vm0, %v42_v4, 0.0  ;;  %113 = vmatpush.msra.mxu1 %v90_v11  ;;  %v150_v16 = vld [vmem:[%s1476_s3] sm:$0xff]  ;;  %v87_v25 = vld [vmem:[%s1478_s5 + $0x8] sm:$0xff]  ;;  %s1126_s20 = smov 56   ;;  %s1127_s21 = smov 40   ;;  %vm220_vm10 = vcmask 64512  }
   0x6   :  { %178 = vrot.lane.b32.xlu1 %v150_v16, %s1117_s26  ;;  %v1232_v22 = vld [vmem:[%s1475_s2] sm:$0xff]  ;;  %1042 = vset.pattern.permute.xlu0 %v1121_v58  ;;  %s1128_s22 = smov 48   ;;  %s1129_s23 = smov 104   ;;  %vm804_vm12 = vcmask 130048   ;;  %vm807_vm13 = vcmask 195584  }
   0x7   :  { %114 = vmatpush.msra.mxu1 %v88_v13  ;;  %v1249_v34 = vld [vmem:[%s1482_s9] sm:$0xff]  ;;  %s1131_s24 = smov 8   ;;  %s1132_s25 = smov 16  }
   0x8   :  { %v83_v38 = vperm.slane %v1249_v34, 2 }
   0x9   :  { %v1049_v7 = vpop.eup %1048  ;;  %115 = vmatpush.msra.mxu1 %v86_v14  ;;  %v151_v14 = vld [vmem:[%s1477_s4] sm:$0xff]  ;;  %s1125_s4 = smov 112  }
   0xa   :  { %v51_v8 = vmul.f32 32.0, %v1049_v7  ;;  %vm55_vm1 = vweird.f32 %v1049_v7 }
   0xb   :  { %135 = vmatpush.msrb.mxu1 %v93_v21 }
   0xc   :  { %v52_v9 = vsub.f32 1.0, %v51_v8  ;;  %v1123_v8 = vmov 80  }
   0xd   :  { %48 = vadd.xlane.f32.xlu0 %v47_v5  ;;  %136 = vmatpush.msrb.mxu1 %v91_v23 }
   0xe   :  { %v53_v12 = vmul.f32 %v1049_v7, %v52_v9  ;;  %173 = vrot.lane.b32.xlu1 %v1232_v22, %s1119_s13 }
   0xf   :  { %137 = vmatpush.msrb.mxu1 %v89_v24 }
  0x10   :  { %v54_v15 = vadd.f32 %v1049_v7, %v53_v12 }
  0x11   :  { %138 = vmatpush.msrb.mxu1 %v87_v25 }
  0x12   :  { %v1223_v17 = vsel %vm55_vm1, %v1049_v7, %v54_v15  ;;  %v1122_v7 = vmov 72  }
  0x21   :  { %155 = vrot.lane.b32.xlu0 %v150_v16, %s1118_s27 }
  0x78   :  { %v46_v18 = vpop.xlane.xlu0 %45  ;;  %v179_v49 = vpop.permute.xlu1 %178 }
  0x79   :  { %v57_v19 = vmul.f32 %v1223_v17, %v46_v18 }
  0x7b   :  { %v59_v20 = vadd.f32 1e-08, %v57_v19 }
  0x7d   :  { %1050 = vrsqrt.f32 %v59_v20  ;;  %vm67_vm3 = vweird.f32 %v59_v20 }
  0x80   :  { %v49_v26 = vpop.xlane.xlu0 %48  ;;  %v174_v59 = vpop.permute.xlu1 %173 }
  0x81   :  { %v58_v27 = vmul.f32 %v1223_v17, %v49_v26 }
  0x83   :  { %v1051_v28 = vpop.eup %1050  ;;  %v60_v29 = vadd.f32 1e-08, %v58_v27 }
  0x84   :  { %v62_v30 = vmul.f32 %v1051_v28, %v59_v20  ;;  %vm68_vm2 = vweird.f32 %v1051_v28 }
  0x85   :  { %1052 = vrsqrt.f32 %v60_v29  ;;  %vm69_vm4 = vmor %vm67_vm3, %vm68_vm2  ;;  %vm77_vm5 = vweird.f32 %v60_v29 }
  0x86   :  { %v63_v31 = vmul.f32 %v1051_v28, %v62_v30 }
  0x88   :  { %v64_v32 = vmul.f32 0.5, %v63_v31 }
  0x8a   :  { %v65_v33 = vsub.f32 1.5, %v64_v32 }
  0x8b   :  { %v1053_v35 = vpop.eup %1052 }
  0x8c   :  { %v66_v36 = vmul.f32 %v1051_v28, %v65_v33  ;;  %v72_v37 = vmul.f32 %v1053_v35, %v60_v29  ;;  %vm78_vm6 = vweird.f32 %v1053_v35 }
  0x8d   :  { %vm79_vm7 = vmor %vm77_vm5, %vm78_vm6 }
  0x8e   :  { %v73_v39 = vmul.f32 %v1053_v35, %v72_v37  ;;  %v70_v40 = vsel %vm69_vm4, %v1051_v28, %v66_v36 }
  0x8f   :  { %v81_v41 = vmul.f32 %v70_v40, %v1194_v0 }
  0x90   :  { %v74_v42 = vmul.f32 0.5, %v73_v39 }
  0x91   :  { %v84_v43 = vmul.f32 %v83_v38, %v81_v41 }
  0x92   :  { %v75_v44 = vsub.f32 1.5, %v74_v42 }
  0x93   :  { %983 = vmatmul.msk.f32.vlgmr.msra.gmra.mxu1 %vm43_vm0, %v84_v43  ;;  %v156_v52 = vpop.permute.xlu0 %155 }
  0x94   :  { %v76_v45 = vmul.f32 %v1053_v35, %v75_v44  ;;  %v146_v44 = vperm.slane %v1249_v34, 0 }
  0x96   :  { %v80_v46 = vsel %vm79_vm7, %v1053_v35, %v76_v45 }
  0x97   :  { %v82_v47 = vmul.f32 %v80_v46, %v1201_v2 }
  0x99   :  { %v85_v48 = vmul.f32 %v83_v38, %v82_v47 }
  0x9b   :  { %984 = vmatmul.msk.f32.gmra.mxu1 %vm43_vm0, %v85_v48 }
  0xa3   :  { %985 = vmatmul.msk.f32.vlgmr.msrb.gmra.mxu1 %vm43_vm0, %v84_v43 }
  0xab   :  { %986 = vmatmul.msk.f32.gmra.mxu1 %vm43_vm0, %v85_v48 }
 0x110   :  { %v117_v50 = vpop.f32.mrf.mxu1 }
 0x111   :  { %v181_v51 = vmul.f32 %v179_v49, %v117_v50  ;;  %v158_v56 = vmul.f32 %v156_v52, %v117_v50  ;;  %v176_v60 = vmul.f32 %v174_v59, %v117_v50  ;;  %v152_v12 = vmul.f32 %v1232_v22, %v117_v50 }
 0x113   :  { %185 = vrot.lane.b32.xlu2 %v181_v51, %s1117_s26 }
 0x118   :  { %v120_v53 = vpop.f32.mrf.mxu1 }
 0x119   :  { %v182_v54 = vmul.f32 %v179_v49, %v120_v53  ;;  %v159_v55 = vmul.f32 %v156_v52, %v120_v53  ;;  %v177_v3 = vmul.f32 %v174_v59, %v120_v53  ;;  %v153_v18 = vmul.f32 %v1232_v22, %v120_v53 }
 0x11b   :  { %187 = vrot.lane.b32.xlu2 %v182_v54, %s1117_s26  ;;  %164 = vrot.lane.b32.xlu0 %v159_v55, %s1117_s26  ;;  %v193_v55 = vlaneseq }
 0x11d   :  { %v196_v57 = vand.u32 127, %v193_v55 }
 0x120   :  { %v140_v43 = vpop.f32.mrf.mxu1 }
 0x121   :  { %v1293_v46 = vadd.f32 %v146_v44, %v140_v43 }
 0x123   :  { %162 = vrot.lane.b32.xlu2 %v158_v56, %s1117_s26  ;;  %v194_v56 = vshrl.u32 %v193_v55, 7  ;;  %s1133_s26 = smov 24  }
 0x125   :  { %vm197_vm11 = vcmp.ge.s32.totalorder %v194_v56, %v196_v57 }
 0x128   :  { %v143_v48 = vpop.f32.mrf.mxu1 }
 0x129   :  { %v1299_v50 = vadd.f32 %v146_v44, %v143_v48 }
 0x16d   :  { %v186_v61 = vpop.permute.xlu2 %185 }
 0x16e   :  { %v1262_v62 = vadd.f32 %v186_v61, %v176_v60 }
 0x170   :  { %vm200_vm8 = vcmp.eq.f32.partialorder %v1262_v62, 0.0 }
 0x171   :  { %v203_v1 = vsel %vm200_vm8, %v202_v63, 1.0 }
 0x172   :  { %207 = vperm.xlu1 %1036, %v203_v1  }
 0x175   :  { %v188_v4 = vpop.permute.xlu2 %187 }
 0x176   :  { %v192_v5 = vadd.f32 %v188_v4, %v177_v3 }
 0x178   :  { %vm201_vm9 = vcmp.eq.f32.partialorder %v192_v5, 0.0 }
 0x179   :  { %v204_v6 = vsel %vm201_vm9, %v202_v63, 1.0 }
 0x17a   :  { %1037 = vset.pattern.permute.xlu1 %v1122_v7  ;;  %421 = vperm.xlu0 %1042, %v204_v6  }
 0x17b   :  { %212 = vperm.xlu2 %1038, %v204_v6   ;;  %277 = vperm.xlu1 %1037, %v203_v1  }
 0x17d   :  { %v163_v9 = vpop.permute.xlu2 %162 }
 0x17e   :  { %v168_v13 = vadd.f32 %v163_v9, %v152_v12 }
 0x180   :  { %v170_v15 = vadd.f32 %v168_v13, %v151_v14 }
 0x183   :  { %1039 = vset.pattern.permute.xlu2 %v1123_v8  ;;  %281 = vperm.xlu1 %1037, %v204_v6  }
 0x184   :  { %347 = vperm.xlu2 %1039, %v203_v1  }
 0x18b   :  { %1040 = vset.pattern.permute.xlu1 %v1123_v8 }
 0x18c   :  { %1041 = vset.pattern.permute.xlu2 %v1121_v58  ;;  %351 = vperm.xlu1 %1040, %v204_v6   ;;  %v1130_v58 = vmov 0.0  }
 0x18d   :  { %417 = vperm.xlu2 %1041, %v203_v1   ;;  %v165_v16 = vpop.permute.xlu0 %164  ;;  %v987_v59 = vsel %vm197_vm11, 1.0, %v1130_v58 }
 0x18e   :  { %v169_v19 = vadd.f32 %v165_v16, %v153_v18 }
 0x190   :  { %v171_v23 = vadd.f32 %v169_v19, %v151_v14 }
 0x1d5   :  { %v213_v10 = vpop.permute.xlu2 %212 }
 0x1d6   :  { %v216_v11 = vmul.f32 %v213_v10, %v192_v5 }
 0x1d8   :  { %247 = vrot.lane.b32.xlu2 %v216_v11, %s1119_s13 }
 0x1de   :  { %v348_v26 = vpop.permute.xlu2 %347 }
 0x1df   :  { %v354_v30 = vmul.f32 %v348_v26, %v1262_v62 }
 0x1e0   :  { %286 = vrot.lane.b32.xlu2 %v170_v15, %s1124_s19 }
 0x1e4   :  { %v208_v20 = vpop.permute.xlu1 %207 }
 0x1e5   :  { %v215_v21 = vmul.f32 %v208_v20, %v1262_v62 }
 0x1e7   :  { %218 = vrot.lane.b32.xlu1 %v215_v21, %s1119_s13  ;;  %v418_v33 = vpop.permute.xlu2 %417 }
 0x1e8   :  { %315 = vrot.lane.b32.xlu2 %v171_v23, %s1124_s19  ;;  %v424_v35 = vmul.f32 %v418_v33, %v1262_v62 }
 0x1ec   :  { %v422_v22 = vpop.permute.xlu0 %421 }
 0x1ed   :  { %v278_v24 = vpop.permute.xlu1 %277  ;;  %v425_v28 = vmul.f32 %v422_v22, %v192_v5 }
 0x1ee   :  { %v284_v25 = vmul.f32 %v278_v24, %v1262_v62  ;;  %v1043_v24 = vpack.i.bf16 %v1299_v50, %v1293_v46 }
 0x1f0   :  { %385 = vrot.lane.b32.xlu2 %v171_v23, %s1125_s4  ;;  %289 = vrot.lane.b32.xlu1 %v284_v25, %s1126_s20 }
 0x1f5   :  { %v282_v27 = vpop.permute.xlu1 %281 }
 0x1f6   :  { %v285_v29 = vmul.f32 %v282_v27, %v192_v5 }
 0x1f8   :  { %458 = vrot.lane.b32.xlu2 %v425_v28, %s1127_s21  ;;  %318 = vrot.lane.b32.xlu0 %v285_v29, %s1126_s20 }
 0x1f9   :  { %359 = vrot.lane.b32.xlu1 %v354_v30, %s1128_s22 }
 0x1fe   :  { %v352_v31 = vpop.permute.xlu1 %351 }
 0x1ff   :  { %v355_v32 = vmul.f32 %v352_v31, %v192_v5 }
 0x200   :  { %356 = vrot.lane.b32.xlu0 %v170_v15, %s1125_s4 }
 0x201   :  { %388 = vrot.lane.b32.xlu1 %v355_v32, %s1128_s22  ;;  %s1135_s22 = smov 128  }
 0x208   :  { %429 = vrot.lane.b32.xlu0 %v424_v35, %s1127_s21  ;;  %s971_s21 = sshll.u32 %s1483_s10, 4  ;;  %s972_s21 = int_to_ptr.hbm [resolvable:$true] %s971_s21 }
 0x209   :  { %426 = vrot.lane.b32.xlu1 %v170_v15, %s1129_s23 }
 0x210   :  { %455 = vrot.lane.b32.xlu0 %v171_v23, %s1129_s23 }
 0x232   :  { %v248_v36 = vpop.permute.xlu2 %247 }
 0x233   :  { %990 = vmatpush.xpose.msk.msra.mxu3 %vm220_vm10, %v248_v36 }
 0x236   :  { %991 = vmatmul.msk.f32.vlgmr.msra.gmra.mxu3 %vm220_vm10, %v171_v23 }
 0x23a   :  { %v287_v37 = vpop.permute.xlu2 %286 }
 0x242   :  { %v316_v38 = vpop.permute.xlu2 %315 }
 0x24a   :  { %v386_v39 = vpop.permute.xlu2 %385 }
 0x252   :  { %v459_v40 = vpop.permute.xlu2 %458 }
 0x253   :  { %1002 = vmatpush.xpose.msk.msra.mxu1 %vm220_vm10, %v459_v40 }
 0x259   :  { %v219_v41 = vpop.permute.xlu1 %218 }
 0x25a   :  { %988 = vmatpush.xpose.msk.msra.mxu2 %vm220_vm10, %v219_v41 }
 0x25d   :  { %989 = vmatmul.msk.f32.vlgmr.msra.gmra.mxu2 %vm220_vm10, %v170_v15 }
 0x262   :  { %v290_v42 = vpop.permute.xlu1 %289 }
 0x263   :  { %992 = vmatpush.xpose.msk.msrb.mxu2 %vm220_vm10, %v290_v42 }
 0x266   :  { %993 = vmatmul.msk.f32.vlgmr.msrb.gmra.mxu2 %vm220_vm10, %v287_v37 }
 0x26a   :  { %v319_v45 = vpop.permute.xlu0 %318 }
 0x26b   :  { %v360_v47 = vpop.permute.xlu1 %359  ;;  %994 = vmatpush.xpose.msk.msrb.mxu3 %vm220_vm10, %v319_v45 }
 0x26c   :  { %996 = vmatpush.xpose.msk.msra.mxu2 %vm220_vm10, %v360_v47 }
 0x26e   :  { %995 = vmatmul.msk.f32.vlgmr.msrb.gmra.mxu3 %vm220_vm10, %v316_v38 }
 0x270   :  { %592 = vmatpush.msrb.mxu2 %v1293_v46 }
 0x272   :  { %v357_v49 = vpop.permute.xlu0 %356 }
 0x273   :  { %v389_v51 = vpop.permute.xlu1 %388  ;;  %997 = vmatmul.msk.f32.vlgmr.msra.gmra.mxu2 %vm220_vm10, %v357_v49 }
 0x274   :  { %998 = vmatpush.xpose.msk.msra.mxu3 %vm220_vm10, %v389_v51 }
 0x277   :  { %999 = vmatmul.msk.f32.vlgmr.msra.gmra.mxu3 %vm220_vm10, %v386_v39 }
 0x278   :  { %615 = vmatpush.msrb.mxu3 %v1299_v50 }
 0x27a   :  { %v430_v52 = vpop.permute.xlu0 %429 }
 0x27b   :  { %1000 = vmatpush.xpose.msk.msra.mxu0 %vm220_vm10, %v430_v52  ;;  %v427_v53 = vpop.permute.xlu1 %426 }
 0x27e   :  { %1001 = vmatmul.msk.f32.vlgmr.msra.gmra.mxu0 %vm220_vm10, %v427_v53 }
 0x282   :  { %v456_v54 = vpop.permute.xlu0 %455 }
 0x283   :  { %1003 = vmatmul.msk.f32.vlgmr.msra.gmra.mxu1 %vm220_vm10, %v456_v54 }
 0x2b9   :  { %v271_v63 = vpop.f32.mrf.mxu3 }
 0x2ba   :  { %v275_v18 = vmul.f32 %v987_v59, %v271_v63 }
 0x2bc   :  { %v489_v20 = vsel %vm220_vm10, %v275_v18, -inf }
 0x2e0   :  { %v243_v60 = vpop.f32.mrf.mxu2 }
 0x2e1   :  { %v274_v61 = vmul.f32 %v987_v59, %v243_v60 }
 0x2e3   :  { %v486_v62 = vsel %vm220_vm10, %v274_v61, -inf }
 0x2e4   :  { %487 = vmax.xlane.f32.xlu1 %v486_v62 }
 0x2e9   :  { %v312_v1 = vpop.f32.mrf.mxu2 }
 0x2ea   :  { %v344_v3 = vmul.f32 %v987_v59, %v312_v1 }
 0x2ec   :  { %v492_v4 = vsel %vm220_vm10, %v344_v3, -inf }
 0x2ed   :  { %493 = vmax.xlane.f32.xlu2 %v492_v4 }
 0x2f1   :  { %v341_v5 = vpop.f32.mrf.mxu3 }
 0x2f2   :  { %v345_v21 = vmul.f32 %v987_v59, %v341_v5 }
 0x2f4   :  { %v495_v23 = vsel %vm220_vm10, %v345_v21, -inf }
 0x2f6   :  { %v382_v6 = vpop.f32.mrf.mxu2 }
 0x2f7   :  { %v414_v7 = vmul.f32 %v987_v59, %v382_v6 }
 0x2f9   :  { %v498_v8 = vsel %vm220_vm10, %v414_v7, -inf }
 0x2fa   :  { %499 = vmax.xlane.f32.xlu2 %v498_v8  ;;  %v411_v9 = vpop.f32.mrf.mxu3 }
 0x2fb   :  { %v452_v10 = vpop.f32.mrf.mxu0  ;;  %v1311_v12 = vmul.f32 %v987_v59, %v411_v9 }
 0x2fc   :  { %v484_v11 = vmul.f32 %v987_v59, %v452_v10 }
 0x2fd   :  { %v501_v16 = vsel %vm220_vm10, %v1311_v12, -inf }
 0x2fe   :  { %v504_v13 = vsel %vm220_vm10, %v484_v11, -inf }
 0x2ff   :  { %505 = vmax.xlane.f32.xlu0 %v504_v13 }
 0x300   :  { %v481_v14 = vpop.f32.mrf.mxu1 }
 0x301   :  { %v485_v15 = vmul.f32 %v987_v59, %v481_v14 }
 0x302   :  { %502 = vmax.xlane.f32.xlu2 %v501_v16 }
 0x303   :  { %v507_v19 = vsel %vm220_vm10, %v485_v15, -inf }
 0x304   :  { %508 = vmax.xlane.f32.xlu1 %v507_v19 }
 0x307   :  { %490 = vmax.xlane.f32.xlu0 %v489_v20 }
 0x30c   :  { %496 = vmax.xlane.f32.xlu1 %v495_v23 }
 0x31a   :  { %1044 = vrot.lane.b32.xlu2 %v1043_v24, %s1124_s19 }
 0x325   :  { %674 = vrot.lane.b32.xlu1 %v1293_v46, %s1125_s4 }
 0x357   :  { %v488_v25 = vpop.xlane.xlu1 %487 }
 0x358   :  { %v510_v22 = vsub.f32 %v274_v61, %v488_v25 }
 0x35a   :  { %v518_v26 = vmul.f32 1.442695, %v510_v22 }
 0x35c   :  { %1054 = vpow2.f32 %v518_v26 }
 0x360   :  { %v494_v27 = vpop.xlane.xlu2 %493 }
 0x361   :  { %v512_v28 = vsub.f32 %v344_v3, %v494_v27 }
 0x362   :  { %v1324_v29 = vpop.eup %1054 }
 0x363   :  { %v522_v30 = vmul.f32 1.442695, %v512_v28  ;;  %v534_v31 = vsel %vm220_vm10, %v1324_v29, 0.0 }
 0x364   :  { %535 = vadd.xlane.f32.xlu0 %v534_v31 }
 0x365   :  { %1056 = vpow2.f32 %v522_v30 }
 0x36b   :  { %v1328_v32 = vpop.eup %1056 }
 0x36c   :  { %v540_v33 = vsel %vm220_vm10, %v1328_v32, 0.0 }
 0x36d   :  { %541 = vadd.xlane.f32.xlu2 %v540_v33  ;;  %v500_v35 = vpop.xlane.xlu2 %499 }
 0x36e   :  { %v514_v42 = vsub.f32 %v414_v7, %v500_v35 }
 0x370   :  { %v526_v51 = vmul.f32 1.442695, %v514_v42 }
 0x372   :  { %v506_v36 = vpop.xlane.xlu0 %505 }
 0x373   :  { %v516_v37 = vsub.f32 %v484_v11, %v506_v36 }
 0x375   :  { %v530_v38 = vmul.f32 1.442695, %v516_v37  ;;  %v503_v39 = vpop.xlane.xlu2 %502 }
 0x376   :  { %v515_v58 = vsub.f32 %v1311_v12, %v503_v39 }
 0x377   :  { %1058 = vpow2.f32 %v530_v38  ;;  %v509_v40 = vpop.xlane.xlu1 %508 }
 0x378   :  { %v517_v41 = vsub.f32 %v485_v15, %v509_v40  ;;  %v528_v62 = vmul.f32 1.442695, %v515_v58 }
 0x37a   :  { %v532_v43 = vmul.f32 1.442695, %v517_v41  ;;  %v491_v44 = vpop.xlane.xlu0 %490 }
 0x37b   :  { %v511_v45 = vsub.f32 %v275_v18, %v491_v44  ;;  %v813_v44 = vld [vmem:[%s1479_s6 + $0x18] sm:$0xff] }
 0x37c   :  { %1060 = vpow2.f32 %v532_v43 }
 0x37d   :  { %v1332_v47 = vpop.eup %1058  ;;  %v520_v48 = vmul.f32 1.442695, %v511_v45  ;;  %v1045_v49 = vpop.permute.xlu2 %1044  ;;  %v812_v45 = vld [vmem:[%s1479_s6 + $0x10] sm:$0xff] }
 0x37e   :  { %v1047_v52 = vunpack.i.h.bf16 %v1045_v49  ;;  %v552_v53 = vsel %vm220_vm10, %v1332_v47, 0.0  ;;  %v1046_v54 = vunpack.i.l.bf16 %v1045_v49 }
 0x37f   :  { %1062 = vpow2.f32 %v520_v48  ;;  %553 = vadd.xlane.f32.xlu1 %v552_v53  ;;  %v497_v55 = vpop.xlane.xlu1 %496  ;;  %v810_v48 = vld [vmem:[%s1479_s6] sm:$0xff] }
 0x380   :  { %v513_v56 = vsub.f32 %v345_v21, %v497_v55  ;;  %642 = vmatpush.msrb.mxu0 %v1046_v54  ;;  %669 = vmatpush.msrb.mxu1 %v1047_v52  ;;  %1064 = vpow2.f32 %v526_v51 }
 0x382   :  { %v1336_v57 = vpop.eup %1060  ;;  %v524_v59 = vmul.f32 1.442695, %v513_v56 }
 0x383   :  { %v555_v60 = vsel %vm220_vm10, %v1336_v57, 0.0 }
 0x384   :  { %1066 = vpow2.f32 %v524_v59  ;;  %556 = vadd.xlane.f32.xlu0 %v555_v60 }
 0x385   :  { %v1063_v61 = vpop.eup %1062  ;;  %1068 = vpow2.f32 %v528_v62  ;;  %v814_v62 = vperm.slane %v1249_v34, 1 }
 0x386   :  { %v537_v63 = vsel %vm220_vm10, %v1063_v61, 0.0  ;;  %v1065_v1 = vpop.eup %1064 }
 0x387   :  { %538 = vadd.xlane.f32.xlu1 %v537_v63  ;;  %v546_v5 = vsel %vm220_vm10, %v1065_v1, 0.0 }
 0x38a   :  { %v1067_v3 = vpop.eup %1066 }
 0x38b   :  { %v543_v4 = vsel %vm220_vm10, %v1067_v3, 0.0  ;;  %v1069_v6 = vpop.eup %1068 }
 0x38c   :  { %544 = vadd.xlane.f32.xlu2 %v543_v4  ;;  %547 = vadd.xlane.f32.xlu0 %v546_v5  ;;  %v549_v7 = vsel %vm220_vm10, %v1069_v6, 0.0 }
 0x394   :  { %550 = vadd.xlane.f32.xlu0 %v549_v7 }
 0x397   :  { %v675_v8 = vpop.permute.xlu1 %674 }
 0x398   :  { %695 = vmatpush.msra.mxu2 %v675_v8 }
 0x3a0   :  { %752 = vrot.lane.b32.xlu1 %v1299_v50, %s1129_s23 }
 0x3a4   :  { %700 = vrot.lane.b32.xlu2 %v1299_v50, %s1125_s4 }
 0x3a8   :  { %726 = vrot.lane.b32.xlu0 %v1293_v46, %s1129_s23 }
 0x3d7   :  { %v536_v9 = vpop.xlane.xlu0 %535 }
 0x3d8   :  { %1070 = vrcp.f32 %v536_v9 }
 0x3de   :  { %v1071_v10 = vpop.eup %1070 }
 0x3df   :  { %v566_v11 = vmul.f32 %v1071_v10, %v1324_v29 }
 0x3e0   :  { %v542_v12 = vpop.xlane.xlu2 %541 }
 0x3e1   :  { %1072 = vrcp.f32 %v542_v12  ;;  %1004 = vmatmul.msk.f32.vlgmr.msrb.gmra.mxu2 %vm220_vm10, %v566_v11  ;;  %v886_v11 = vld [vmem:[%s1480_s7 + $0x18] sm:$0xff]  ;;  %v885_v12 = vld [vmem:[%s1480_s7 + $0x10] sm:$0xff] }
 0x3e2   :  { %833 = vmatpush.msrb.mxu2 %v813_v44 }
 0x3e4   :  { %834 = vmatpush.msrb.mxu2 %v812_v45 }
 0x3e7   :  { %v1073_v13 = vpop.eup %1072 }
 0x3e8   :  { %v568_v14 = vmul.f32 %v1073_v13, %v1328_v32  ;;  %v884_v13 = vld [vmem:[%s1480_s7 + $0x8] sm:$0xff] }
 0x3ea   :  { %1006 = vmatmul.msk.f32.vlgmr.msrb.gmra.mxu0 %vm220_vm10, %v568_v14  ;;  %v883_v14 = vld [vmem:[%s1480_s7] sm:$0xff] }
 0x3f2   :  { %v554_v15 = vpop.xlane.xlu1 %553 }
 0x3f7   :  { %v557_v16 = vpop.xlane.xlu0 %556 }
 0x3fa   :  { %v539_v50 = vpop.xlane.xlu1 %538 }
 0x3fb   :  { %1074 = vrcp.f32 %v539_v50 }
 0x3ff   :  { %v548_v18 = vpop.xlane.xlu0 %547  ;;  %v545_v46 = vpop.xlane.xlu2 %544 }
 0x400   :  { %1076 = vrcp.f32 %v548_v18  ;;  %v934_v18 = vld [vmem:[%s1481_s8 + $0x78] sm:$0xff] }
 0x401   :  { %v1075_v19 = vpop.eup %1074  ;;  %1078 = vrcp.f32 %v545_v46  ;;  %v933_v46 = vld [vmem:[%s1481_s8 + $0x70] sm:$0xff] }
 0x402   :  { %v567_v20 = vmul.f32 %v1075_v19, %v1063_v61  ;;  %v932_v19 = vld [vmem:[%s1481_s8 + $0x68] sm:$0xff] }
 0x404   :  { %1005 = vmatmul.msk.f32.vlgmr.msrb.gmra.mxu3 %vm220_vm10, %v567_v20  ;;  %v931_v20 = vld [vmem:[%s1481_s8 + $0x60] sm:$0xff] }
 0x406   :  { %v1077_v21 = vpop.eup %1076 }
 0x407   :  { %v1079_v23 = vpop.eup %1078  ;;  %v570_v24 = vmul.f32 %v1077_v21, %v1065_v1  ;;  %v551_v25 = vpop.xlane.xlu0 %550 }
 0x408   :  { %v701_v22 = vpop.permute.xlu2 %700  ;;  %v569_v26 = vmul.f32 %v1079_v23, %v1067_v3  ;;  %1080 = vrcp.f32 %v551_v25 }
 0x409   :  { %721 = vmatpush.msra.mxu3 %v701_v22  ;;  %1082 = vrcp.f32 %v557_v16  ;;  %1008 = vmatmul.msk.f32.vlgmr.msra.gmra.mxu2 %vm220_vm10, %v570_v24  ;;  %v930_v24 = vld [vmem:[%s1481_s8 + $0x58] sm:$0xff] }
 0x40a   :  { %1007 = vmatmul.msk.f32.vlgmr.msrb.gmra.mxu1 %vm220_vm10, %v569_v26  ;;  %1084 = vrcp.f32 %v554_v15  ;;  %v929_v26 = vld [vmem:[%s1481_s8 + $0x50] sm:$0xff] }
 0x40b   :  { %906 = vmatpush.msrb.mxu3 %v886_v11 }
 0x40d   :  { %907 = vmatpush.msrb.mxu3 %v885_v12 }
 0x40e   :  { %v1081_v27 = vpop.eup %1080 }
 0x40f   :  { %v1083_v28 = vpop.eup %1082  ;;  %v571_v29 = vmul.f32 %v1081_v27, %v1069_v6  ;;  %908 = vmatpush.msrb.mxu3 %v884_v13 }
 0x410   :  { %v573_v30 = vmul.f32 %v1083_v28, %v1336_v57  ;;  %v1085_v32 = vpop.eup %1084  ;;  %v928_v28 = vld [vmem:[%s1481_s8 + $0x48] sm:$0xff] }
 0x411   :  { %1009 = vmatmul.msk.f32.vlgmr.msra.gmra.mxu3 %vm220_vm10, %v571_v29  ;;  %v572_v33 = vmul.f32 %v1085_v32, %v1332_v47  ;;  %v811_v47 = vld [vmem:[%s1479_s6 + $0x8] sm:$0xff] }
 0x412   :  { %v753_v31 = vpop.permute.xlu1 %752  ;;  %835 = vmatpush.msrb.mxu2 %v811_v47  ;;  %909 = vmatpush.msrb.mxu3 %v883_v14  ;;  %v922_v47 = vld [vmem:[%s1481_s8 + $0x18] sm:$0xff] }
 0x413   :  { %773 = vmatpush.msra.mxu1 %v753_v31  ;;  %v926_v31 = vld [vmem:[%s1481_s8 + $0x38] sm:$0xff] }
 0x414   :  { %1011 = vmatmul.msk.f32.vlgmr.msra.gmra.mxu1 %vm220_vm10, %v573_v30  ;;  %836 = vmatpush.msrb.mxu2 %v810_v48 }
 0x41a   :  { %v727_v35 = vpop.permute.xlu0 %726 }
 0x41b   :  { %747 = vmatpush.msra.mxu0 %v727_v35  ;;  %v925_v35 = vld [vmem:[%s1481_s8 + $0x30] sm:$0xff] }
 0x41c   :  { %1010 = vmatmul.msk.f32.vlgmr.msra.gmra.mxu0 %vm220_vm10, %v572_v33 }
 0x41d   :  { %936 = vmatpush.msrb.mxu0 %v934_v18 }
 0x41f   :  { %937 = vmatpush.msrb.mxu0 %v933_v46 }
 0x421   :  { %938 = vmatpush.msrb.mxu0 %v932_v19 }
 0x423   :  { %939 = vmatpush.msrb.mxu0 %v931_v20 }
 0x425   :  { %940 = vmatpush.msrb.mxu0 %v930_v24 }
 0x427   :  { %941 = vmatpush.msrb.mxu0 %v929_v26 }
 0x429   :  { %942 = vmatpush.msrb.mxu0 %v928_v28 }
 0x464   :  { %v594_v37 = vpop.f32.mrf.mxu2 }
 0x467   :  { %v644_v36 = vpop.f32.mrf.mxu0 }
 0x468   :  { %780 = vrot.lane.b32.xlu2 %v644_v36, %s1131_s24 }
 0x487   :  { %v671_v38 = vpop.f32.mrf.mxu1  ;;  %v617_v39 = vpop.f32.mrf.mxu3 }
 0x488   :  { %782 = vrot.lane.b32.xlu2 %v671_v38, %s1131_s24  ;;  %v880_v38 = vperm.slane %v1249_v34, 3 }
 0x48c   :  { %v697_v40 = vpop.f32.mrf.mxu2 }
 0x48d   :  { %788 = vrot.lane.b32.xlu0 %v697_v40, %s1132_s25 }
 0x491   :  { %v775_v43 = vpop.f32.mrf.mxu1 }
 0x494   :  { %v723_v41 = vpop.f32.mrf.mxu3 }
 0x495   :  { %790 = vrot.lane.b32.xlu0 %v723_v41, %s1132_s25 }
 0x499   :  { %v749_v42 = vpop.f32.mrf.mxu0 }
 0x49a   :  { %796 = vrot.lane.b32.xlu1 %v749_v42, %s1133_s26 }
 0x4a2   :  { %798 = vrot.lane.b32.xlu1 %v775_v43, %s1133_s26  ;;  %v923_v43 = vld [vmem:[%s1481_s8 + $0x20] sm:$0xff] }
 0x4c2   :  { %v781_v51 = vpop.permute.xlu2 %780 }
 0x4c3   :  { %v802_v52 = vsel %vm220_vm10, %v594_v37, %v781_v51 }
 0x4e2   :  { %v783_v56 = vpop.permute.xlu2 %782 }
 0x4e3   :  { %v803_v58 = vsel %vm220_vm10, %v617_v39, %v783_v56  ;;  %v924_v39 = vld [vmem:[%s1481_s8 + $0x28] sm:$0xff]  ;;  %v919_v56 = vld [vmem:[%s1481_s8] sm:$0xff] }
 0x4ff   :  { %v789_v49 = vpop.permute.xlu0 %788 }
 0x500   :  { %v805_v53 = vsel %vm804_vm12, %v802_v52, %v789_v49 }
 0x507   :  { %v791_v57 = vpop.permute.xlu0 %790 }
 0x508   :  { %v806_v59 = vsel %vm804_vm12, %v803_v58, %v791_v57  ;;  %v887_v57 = vperm.slane %v1249_v34, 5 }
 0x50c   :  { %v797_v54 = vpop.permute.xlu1 %796 }
 0x50d   :  { %v808_v55 = vsel %vm807_vm13, %v805_v53, %v797_v54  ;;  %v921_v54 = vld [vmem:[%s1481_s8 + $0x10] sm:$0xff] }
 0x50e   :  { %1012 = vmatmul.msk.f32.vlgmr.msrb.gmra.mxu2 %vm43_vm0, %v808_v55  ;;  %v920_v55 = vld [vmem:[%s1481_s8 + $0x8] sm:$0xff] }
 0x514   :  { %v799_v60 = vpop.permute.xlu1 %798 }
 0x515   :  { %v809_v61 = vsel %vm807_vm13, %v806_v59, %v799_v60 }
 0x516   :  { %1013 = vmatmul.msk.f32.gmra.mxu2 %vm43_vm0, %v809_v61 }
 0x591   :  { %v838_v63 = vpop.f32.mrf.mxu2 }
 0x592   :  { %v839_v1 = vadd.f32 %v838_v63, %v814_v62 }
 0x594   :  { %v1383_v3 = vadd.f32 %v839_v1, %v1194_v0  ;;  %v935_v1 = vperm.slane %v1249_v34, 4 }
 0x596   :  { %v846_v4 = vmul.f32 %v1383_v3, %v1383_v3 }
 0x598   :  { %v848_v5 = vsel %vm43_vm0, %v846_v4, 0.0 }
 0x599   :  { %849 = vadd.xlane.f32.xlu2 %v848_v5  ;;  %v841_v6 = vpop.f32.mrf.mxu2 }
 0x59a   :  { %v842_v7 = vadd.f32 %v841_v6, %v814_v62 }
 0x59c   :  { %v1389_v8 = vadd.f32 %v842_v7, %v1201_v2 }
 0x59e   :  { %v847_v9 = vmul.f32 %v1389_v8, %v1389_v8 }
 0x5a0   :  { %v851_v10 = vsel %vm43_vm0, %v847_v9, 0.0 }
 0x5a1   :  { %852 = vadd.xlane.f32.xlu0 %v851_v10 }
 0x60c   :  { %v850_v15 = vpop.xlane.xlu2 %849 }
 0x60d   :  { %v854_v16 = vmul.f32 %v850_v15, %v1223_v17 }
 0x60f   :  { %v856_v50 = vadd.f32 1e-08, %v854_v16 }
 0x611   :  { %1086 = vrsqrt.f32 %v856_v50  ;;  %vm864_vm15 = vweird.f32 %v856_v50 }
 0x614   :  { %v853_v21 = vpop.xlane.xlu0 %852 }
 0x615   :  { %v855_v23 = vmul.f32 %v853_v21, %v1223_v17  ;;  %v927_v17 = vld [vmem:[%s1481_s8 + $0x40] sm:$0xff]  ;;  %s1134_s8 = smov [#allocation3]  }
 0x616   :  { %943 = vmatpush.msrb.mxu0 %v927_v17  ;;  %s969_s4 = sshll.u32 %s1134_s8, 4  ;;  %s970_s4 = int_to_ptr.vmem [resolvable:$true] %s969_s4 }
 0x617   :  { %v1087_v25 = vpop.eup %1086  ;;  %v857_v22 = vadd.f32 1e-08, %v855_v23 }
 0x618   :  { %v859_v27 = vmul.f32 %v1087_v25, %v856_v50  ;;  %vm865_vm14 = vweird.f32 %v1087_v25  ;;  %944 = vmatpush.msrb.mxu0 %v926_v31 }
 0x619   :  { %1088 = vrsqrt.f32 %v857_v22  ;;  %vm866_vm1 = vmor %vm864_vm15, %vm865_vm14  ;;  %vm874_vm3 = vweird.f32 %v857_v22 }
 0x61a   :  { %v860_v29 = vmul.f32 %v1087_v25, %v859_v27  ;;  %945 = vmatpush.msrb.mxu0 %v925_v35 }
 0x61c   :  { %v861_v30 = vmul.f32 0.5, %v860_v29  ;;  %946 = vmatpush.msrb.mxu0 %v924_v39 }
 0x61e   :  { %v862_v32 = vsub.f32 1.5, %v861_v30  ;;  %947 = vmatpush.msrb.mxu0 %v923_v43 }
 0x61f   :  { %v1089_v33 = vpop.eup %1088 }
 0x620   :  { %v863_v36 = vmul.f32 %v1087_v25, %v862_v32  ;;  %v869_v37 = vmul.f32 %v1089_v33, %v857_v22  ;;  %vm875_vm2 = vweird.f32 %v1089_v33  ;;  %948 = vmatpush.msrb.mxu0 %v922_v47 }
 0x621   :  { %vm876_vm4 = vmor %vm874_vm3, %vm875_vm2 }
 0x622   :  { %v867_v40 = vsel %vm866_vm1, %v1087_v25, %v863_v36  ;;  %v870_v41 = vmul.f32 %v1089_v33, %v869_v37  ;;  %949 = vmatpush.msrb.mxu0 %v921_v54 }
 0x623   :  { %v878_v42 = vmul.f32 %v867_v40, %v1383_v3 }
 0x624   :  { %v871_v44 = vmul.f32 0.5, %v870_v41  ;;  %950 = vmatpush.msrb.mxu0 %v920_v55 }
 0x625   :  { %v881_v45 = vmul.f32 %v880_v38, %v878_v42 }
 0x626   :  { %v872_v48 = vsub.f32 1.5, %v871_v44  ;;  %951 = vmatpush.msrb.mxu0 %v919_v56 }
 0x627   :  { %1014 = vmatmul.msk.f32.vlgmr.msrb.gmra.mxu3 %vm43_vm0, %v881_v45 }
 0x628   :  { %v873_v49 = vmul.f32 %v1089_v33, %v872_v48 }
 0x62a   :  { %v877_v51 = vsel %vm876_vm4, %v1089_v33, %v873_v49 }
 0x62b   :  { %v879_v52 = vmul.f32 %v877_v51, %v1389_v8 }
 0x62d   :  { %v882_v53 = vmul.f32 %v880_v38, %v879_v52 }
 0x62f   :  { %1015 = vmatmul.msk.f32.gmra.mxu3 %vm43_vm0, %v882_v53 }
 0x6aa   :  { %v911_v58 = vpop.f32.mrf.mxu3 }
 0x6ab   :  { %v912_v59 = vadd.f32 %v911_v58, %v887_v57 }
 0x6ad   :  { %v917_v60 = vmax.f32 %v912_v59, 0.0 }
 0x6af   :  { %952 = vmatmul.f32.vlgmr.msrb.gmra.mxu0 %v917_v60 }
 0x6b2   :  { %v914_v61 = vpop.f32.mrf.mxu3 }
 0x6b3   :  { %v915_v62 = vadd.f32 %v914_v61, %v887_v57 }
 0x6b5   :  { %v918_v63 = vmax.f32 %v915_v62, 0.0 }
 0x6b7   :  { %955 = vmatmul.f32.gmra.mxu0 %v918_v63 }
 0x72c   :  { %v953_v4 = vpop.f32.mrf.mxu0 }
 0x72d   :  { %v954_v5 = vadd.f32 %v953_v4, %v935_v1 }
 0x72f   :  { %v959_v6 = vadd.f32 %v954_v5, %v1383_v3 }
 0x731   :  { %v961_v7 = vadd.f32 %v959_v6, %v1194_v0 }
 0x733   :  { %963 = vst.msk [vmem:[#allocation3] sm:$0xff] %vm43_vm0, %v961_v7 }
 0x734   :  { %v956_v9 = vpop.f32.mrf.mxu0 }
 0x735   :  { %v957_v10 = vadd.f32 %v956_v9, %v935_v1 }
 0x737   :  { %v960_v11 = vadd.f32 %v957_v10, %v1389_v8 }
 0x739   :  { %v962_v34 = vadd.f32 %v960_v11, %v1201_v2 }
 0x73b   :  { %964 = vst.msk [vmem:[#allocation3 + $0x8] sm:$0xff] %vm43_vm0, %v962_v34 }
 0x73c   :  { %977 = dma.vmem_to_hbm [thread:$0]  %s970_s4, 256, %s972_s21, [#allocation4], %s1135_s22, %s1135_s22, %s1131_s24  }
 0x73d   :  { %1114 = dma.done.wait [#allocation4], 256  }
 0x73e   :  { %1115 = vsyncadd [#allocation4], 4294967040 }
 0x73f   :  { %982 = vsyncpa [#allocation4], 1 }

</bundles_post_ra>
